<compile_context>
chip_gen: v7x
topology: tpu7x:2x2x1
jax: 0.10.0
libtpu: 0.0.40
codegen_flags: <defaults>
</compile_context>

<pallas_src>
import functools

import jax
import jax.numpy as jnp
from jax import lax
from jax.experimental import pallas as pl
from jax.experimental.pallas import tpu as pltpu


C1, C2, C3 = 64, 32, 3          # channel counts of the three convs
CIN = 3                         # real input channels
CIN_PAD = 8                     # input channels padded to one f32 sublane tile
K1, K3 = 9, 5                   # conv1 / conv3 kernel sizes (conv2 is 1x1)
HALO = (K1 // 2) + (K3 // 2)    # 6 rows/cols of zero padding around the image
KW1 = K1 * CIN_PAD              # 72: P1 rows per input row (kw-expanded)
KW3 = K3 * C2                   # 160: P2 rows per conv2 row (kw-expanded)


# ----------------------------------------------------------------------------
# Fused SRCNN kernel: one (batch, row-tile) grid step computes tile_h output
# rows end-to-end, keeping all intermediates in VMEM.
# ----------------------------------------------------------------------------
def _srcnn_fused_kernel(x_hbm, w1_ref, b1_ref, w2_ref, b2_ref, w3_ref, b3_ref,
                        out_ref, x_buf, p1_ref, p2_ref, *, img_h):
    # x_hbm : (B, Ht+12, CIN_PAD, W+12) f32 in HBM (manual DMA of row windows)
    # w1_ref: (C1, K1*K1*CIN_PAD)  b1_ref: (C1, 1)
    # w2_ref: (C2, C1)             b2_ref: (C2, 1)
    # w3_ref: (C3, K3*K3*C2)       b3_ref: (C3, 1)
    # out_ref: (1, tile_h, C3, W)        (N, H, C, W layout)
    # x_buf : VMEM (tile_h+12, CIN_PAD, W+12)     input row window (with halo)
    # p1_ref: VMEM ((tile_h+12)*72, W+4)          kw-expanded input (conv1 rhs)
    # p2_ref: VMEM ((tile_h+4)*160, W)            kw-expanded conv2 act (conv3 rhs)
    b = pl.program_id(0)
    i = pl.program_id(1)

    tile_h = out_ref.shape[1]
    W = out_ref.shape[3]
    W1 = p1_ref.shape[1]             # W + 4  (conv2 cols incl. conv3 halo)
    rows_in = x_buf.shape[0]         # tile_h + 12
    th1 = tile_h + (K3 - 1)          # conv2 rows needed (incl. conv3 row halo)

    # ---- DMA the padded-input row window for this tile into VMEM -----------
    r0 = i * tile_h
    pltpu.sync_copy(x_hbm.at[b, pl.ds(r0, rows_in), :, :], x_buf)

    w1 = w1_ref[...]
    b1 = b1_ref[...]
    w2 = w2_ref[...]
    b2 = b2_ref[...]
    w3 = w3_ref[...]
    b3 = b3_ref[...]

    # Validity mask for the conv2 activation halo: PyTorch's conv3 padding=2
    # pads the conv2 *output* with zeros, so positions outside [0,H)x[0,W)
    # must be zero (not recomputed-from-padded-input values).
    col_ids = lax.broadcasted_iota(jnp.int32, (C2, W1), 1)
    col_valid = jnp.logical_and(col_ids >= (K3 // 2), col_ids < W + (K3 // 2))

    # ---- pass 0: kw-expansion of the input window ---------------------------
    # One (72, W1) slab per input row; only 9 lane-shifted slices per row.
    # P1[r*72 + kw*8 + c, col] = x_buf[r, c, kw + col]
    @pl.loop(0, rows_in)
    def _(r):
        row = x_buf[r]                                        # (CIN_PAD, W+12)
        slab = jnp.concatenate([row[:, kw:kw + W1] for kw in range(K1)], axis=0)
        p1_ref[pl.ds(pl.multiple_of(r * KW1, 8), KW1), :] = slab

    # ---- pass 1+2: conv1(9x9)+ReLU, conv2(1x1)+ReLU, one conv2 row per step -
    # im2col slab for row z is the contiguous, aligned P1[z*72 : z*72+648].
    @pl.loop(0, th1)
    def _(z):
        patches = p1_ref[pl.ds(pl.multiple_of(z * KW1, 8), K1 * KW1), :]
        y1 = jnp.dot(w1, patches, preferred_element_type=jnp.float32) + b1
        y1 = jnp.maximum(y1, 0.0)                             # (C1, W1)
        y2 = jnp.dot(w2, y1, preferred_element_type=jnp.float32) + b2
        y2 = jnp.maximum(y2, 0.0)                             # (C2, W1)

        g = r0 - (K3 // 2) + z                                # global conv2 row
        row_valid = jnp.logical_and(g >= 0, g < img_h)
        y2 = jnp.where(jnp.logical_and(row_valid, col_valid), y2, 0.0)

        # kw-expansion of this conv2 row straight into P2 (no a2 scratch):
        # P2[z*160 + kw*32 + c, col] = y2[c, kw + col]
        slab = jnp.concatenate([y2[:, kw:kw + W] for kw in range(K3)], axis=0)
        p2_ref[pl.ds(pl.multiple_of(z * KW3, 8), KW3), :] = slab

    # ---- pass 3: conv3 (5x5, 32->3), one lane-dense (C3, W) row per step ----
    @pl.loop(0, tile_h)
    def _(y):
        patches = p2_ref[pl.ds(pl.multiple_of(y * KW3, 8), K3 * KW3), :]
        y3 = jnp.dot(w3, patches, preferred_element_type=jnp.float32) + b3
        out_ref[0, y, :, :] = y3.astype(out_ref.dtype)


def _scratch_bytes(tile_h, W):
    rows_in = tile_h + 2 * HALO
    th1 = tile_h + (K3 - 1)
    W1 = W + (K3 - 1)
    Wp = W + 2 * HALO
    return 4 * (rows_in * CIN_PAD * Wp + rows_in * KW1 * W1 + th1 * KW3 * W)


# ----------------------------------------------------------------------------
# Wrapper: layout/pad glue + pallas_call
# ----------------------------------------------------------------------------
def srcnn_forward(params, x_nchw, *, tile_h=32):
    B, cin, H, W = x_nchw.shape
    assert cin == CIN, cin

    # Row-tile size: whole image, or a multiple of 8 (f32 sublane), shrunk so
    # the fused scratch footprint fits a conservative per-core VMEM budget.
    if tile_h >= H:
        tile_h = H
    else:
        tile_h = max(8, (tile_h // 8) * 8)
    while tile_h > 8 and _scratch_bytes(tile_h, W) > 40 * 2**20:
        tile_h = max(8, tile_h - 8)

    n_tiles = pl.cdiv(H, tile_h)
    Ht = n_tiles * tile_h
    Wp = W + 2 * HALO
    W1 = W + (K3 - 1)

    f32 = jnp.float32

    # NCHW -> (N, H, C, W); zero-pad: spatial halo, channels 3->8, and extra
    # bottom rows so tile_h divides the padded height.
    x = jnp.transpose(x_nchw.astype(f32), (0, 2, 1, 3))
    x = jnp.pad(x, ((0, 0),
                    (HALO, HALO + Ht - H),
                    (0, CIN_PAD - CIN),
                    (HALO, HALO)))                        # (B, Ht+12, 8, W+12)

    # Channel-major weights; contraction index order = (kh, kw, cin).
    w1 = jnp.pad(params["w1"].astype(f32),
                 ((0, 0), (0, CIN_PAD - CIN), (0, 0), (0, 0)))
    w1 = jnp.transpose(w1, (0, 2, 3, 1)).reshape(C1, K1 * K1 * CIN_PAD)
    b1 = params["b1"].astype(f32).reshape(C1, 1)
    w2 = params["w2"].astype(f32).reshape(C2, C1)
    b2 = params["b2"].astype(f32).reshape(C2, 1)
    w3 = jnp.transpose(params["w3"].astype(f32),
                       (0, 2, 3, 1)).reshape(C3, K3 * K3 * C2)
    b3 = params["b3"].astype(f32).reshape(C3, 1)

    # Per-core VMEM budget: scratch + double-buffered blocks + loop temps.
    est_bytes = (
        _scratch_bytes(tile_h, W)
        + 4 * 2 * tile_h * C3 * W
        + 4 * 2 * (w1.size + w2.size + w3.size + C1 + C2 + C3)
        + 4 * 2 * (K1 * KW1 + C1 + C2 + KW1 + K3 * KW3) * W1
    )
    vmem_limit = int(min(56 * 2**20, max(32 * 2**20, est_bytes + 8 * 2**20)))

    flops = 2 * B * H * W * (K1 * K1 * CIN * C1 + C1 * C2 + K3 * K3 * C2 * C3)
    bytes_accessed = 4 * (x.size + B * Ht * C3 * W
                          + w1.size + w2.size + w3.size + C1 + C2 + C3)

    kernel = functools.partial(_srcnn_fused_kernel, img_h=H)
    out = pl.pallas_call(
        kernel,
        out_shape=jax.ShapeDtypeStruct((B, Ht, C3, W), f32),
        grid_spec=pltpu.PrefetchScalarGridSpec(
            num_scalar_prefetch=0,
            grid=(B, n_tiles),
            in_specs=[
                pl.BlockSpec(memory_space=pl.ANY),                       # x (HBM)
                pl.BlockSpec((C1, K1 * K1 * CIN_PAD), lambda b, i: (0, 0)),
                pl.BlockSpec((C1, 1), lambda b, i: (0, 0)),
                pl.BlockSpec((C2, C1), lambda b, i: (0, 0)),
                pl.BlockSpec((C2, 1), lambda b, i: (0, 0)),
                pl.BlockSpec((C3, K3 * K3 * C2), lambda b, i: (0, 0)),
                pl.BlockSpec((C3, 1), lambda b, i: (0, 0)),
            ],
            out_specs=pl.BlockSpec((1, tile_h, C3, W),
                                   lambda b, i: (b, i, 0, 0)),
            scratch_shapes=[
                pltpu.VMEM((tile_h + 2 * HALO, CIN_PAD, Wp), f32),  # input window
                pltpu.VMEM(((tile_h + 2 * HALO) * KW1, W1), f32),   # P1 (conv1 rhs)
                pltpu.VMEM(((tile_h + K3 - 1) * KW3, W), f32),      # P2 (conv3 rhs)
            ],
        ),
        compiler_params=pltpu.CompilerParams(
            dimension_semantics=("parallel", "parallel"),
            vmem_limit_bytes=vmem_limit,
        ),
        cost_estimate=pl.CostEstimate(
            flops=flops, transcendentals=0, bytes_accessed=bytes_accessed),
    )(x, w1, b1, w2, b2, w3, b3)

    # (B, Ht, 3, W) -> (B, 3, H, W)
    return jnp.transpose(out, (0, 2, 1, 3))[:, :, :H, :]
    # TODO(synk): optional bf16 inputs for the MXU (f32 accumulation) would
    # roughly halve HBM/VMEM traffic and MXU passes on v5e/v6e/v7x but needs a
    # looser test tolerance, so f32 is kept here.


# ----------------------------------------------------------------------------
# Deterministic parameter init (PyTorch Conv2d default-style uniform bounds)
# ----------------------------------------------------------------------------
def init_params(key):
    ks = jax.random.split(key, 6)

    def conv_init(kw, kb, cout, cin, k):
        fan_in = cin * k * k
        bound = 1.0 / (fan_in ** 0.5)
        w = jax.random.uniform(kw, (cout, cin, k, k), jnp.float32, -bound, bound)
        b = jax.random.uniform(kb, (cout,), jnp.float32, -bound, bound)
        return w, b

    w1, b1 = conv_init(ks[0], ks[1], C1, CIN, K1)
    w2, b2 = conv_init(ks[2], ks[3], C2, C1, 1)
    w3, b3 = conv_init(ks[4], ks[5], C3, C2, K3)
    return dict(w1=w1, b1=b1, w2=w2, b2=b2, w3=w3, b3=b3)


# ----------------------------------------------------------------------------
# Pure-JAX reference (for correctness check only)
# ----------------------------------------------------------------------------
def srcnn_reference(params, x):
    def conv(x, w, b, pad):
        y = lax.conv_general_dilated(
            x, w, window_strides=(1, 1),
            padding=[(pad, pad), (pad, pad)],
            dimension_numbers=("NCHW", "OIHW", "NCHW"))
        return y + b[None, :, None, None]

    x = jnp.maximum(conv(x, params["w1"], params["b1"], K1 // 2), 0.0)
    x = jnp.maximum(conv(x, params["w2"], params["b2"], 0), 0.0)
    return conv(x, params["w3"], params["b3"], K3 // 2)


if __name__ == "__main__":
    key = jax.random.PRNGKey(0)
    k_param, k_x = jax.random.split(key)
    params = init_params(k_param)

    # Small input consistent with SRCNN: batch=2, 3 channels, 16x16 spatial.
    x = jax.random.normal(k_x, (2, 3, 16, 16), jnp.float32)

    fwd = jax.jit(functools.partial(srcnn_forward, tile_h=8))  # 2 row tiles
    out = jax.block_until_ready(fwd(params, x))
    ref = jax.block_until_ready(srcnn_reference(params, x))

    assert out.shape == (2, 3, 16, 16), out.shape
    assert jnp.allclose(out, ref, atol=1e-4, rtol=1e-4), \
        float(jnp.max(jnp.abs(out - ref)))

    print("KERNEL_OK")
</pallas_src>

<mosaic_0001>
module attributes {stable_mosaic.version = 11 : i64} {
  func.func @_srcnn_fused_kernel(%arg0: i32, %arg1: i32, %arg2: memref<2x28x8x28xf32, #tpu.memory_space<any>>, %arg3: memref<64x648xf32, #tpu.memory_space<vmem>>, %arg4: memref<64x1xf32, #tpu.memory_space<vmem>>, %arg5: memref<32x64xf32, #tpu.memory_space<vmem>>, %arg6: memref<32x1xf32, #tpu.memory_space<vmem>>, %arg7: memref<3x800xf32, #tpu.memory_space<vmem>>, %arg8: memref<3x1xf32, #tpu.memory_space<vmem>>, %arg9: memref<1x8x3x16xf32, #tpu.memory_space<vmem>>, %arg10: memref<20x8x28xf32, #tpu.memory_space<vmem>>, %arg11: memref<1440x20xf32, #tpu.memory_space<vmem>>, %arg12: memref<1920x16xf32, #tpu.memory_space<vmem>>) attributes {dimension_semantics = [#tpu.dimension_semantics<parallel>, #tpu.dimension_semantics<parallel>], iteration_bounds = array<i64: 2, 2>, scalar_prefetch = 0 : i64, scratch_operands = 3 : i64, tpu.core_type = #tpu.core_type<tc>, window_params = [{}, {pipeline_mode = #tpu.pipeline_mode<synchronous>, transform_indices = @transform_1, window_bounds = array<i64: 64, 648>}, {pipeline_mode = #tpu.pipeline_mode<synchronous>, transform_indices = @transform_2, window_bounds = array<i64: 64, 1>}, {pipeline_mode = #tpu.pipeline_mode<synchronous>, transform_indices = @transform_3, window_bounds = array<i64: 32, 64>}, {pipeline_mode = #tpu.pipeline_mode<synchronous>, transform_indices = @transform_4, window_bounds = array<i64: 32, 1>}, {pipeline_mode = #tpu.pipeline_mode<synchronous>, transform_indices = @transform_5, window_bounds = array<i64: 3, 800>}, {pipeline_mode = #tpu.pipeline_mode<synchronous>, transform_indices = @transform_6, window_bounds = array<i64: 3, 1>}, {transform_indices = @transform_7, window_bounds = array<i64: 1, 8, 3, 16>}]} {
    %c8_i32 = arith.constant 8 : i32
    %0 = arith.muli %arg1, %c8_i32 : i32
    "tpu.region"() ({
      %16 = tpu.sem_alloc : memref<!tpu.dma_semaphore, #tpu.memory_space<semaphore_mem>>
      %c0_i32_19 = arith.constant 0 : i32
      %c0_i32_20 = arith.constant 0 : i32
      %17 = tpu.memref_slice %arg2[%arg0, %0, %c0_i32_19, %c0_i32_20] : memref<2x28x8x28xf32, #tpu.memory_space<any>> -> memref<1x20x8x28xf32, #tpu.memory_space<any>>
      %18 = tpu.memref_squeeze %17 : memref<1x20x8x28xf32, #tpu.memory_space<any>> -> memref<20x8x28xf32, #tpu.memory_space<any>>
      tpu.enqueue_dma source(%18 : memref<20x8x28xf32, #tpu.memory_space<any>>) target(%arg10 : memref<20x8x28xf32, #tpu.memory_space<vmem>>) target_semaphore(%16 : memref<!tpu.dma_semaphore, #tpu.memory_space<semaphore_mem>>)
      %c0_i32_21 = arith.constant 0 : i32
      %c0_i32_22 = arith.constant 0 : i32
      %19 = tpu.memref_slice %arg2[%arg0, %0, %c0_i32_21, %c0_i32_22] : memref<2x28x8x28xf32, #tpu.memory_space<any>> -> memref<1x20x8x28xf32, #tpu.memory_space<any>>
      %20 = tpu.memref_squeeze %19 : memref<1x20x8x28xf32, #tpu.memory_space<any>> -> memref<20x8x28xf32, #tpu.memory_space<any>>
      tpu.wait_dma2 semaphore(%16 : memref<!tpu.dma_semaphore, #tpu.memory_space<semaphore_mem>>) src(%20 : memref<20x8x28xf32, #tpu.memory_space<any>>) dst(%arg10 : memref<20x8x28xf32, #tpu.memory_space<vmem>>)
      tpu.yield
    }) : () -> ()
    %c0 = arith.constant 0 : index
    %c0_0 = arith.constant 0 : index
    %1 = vector.load %arg3[%c0, %c0_0] : memref<64x648xf32, #tpu.memory_space<vmem>>, vector<64x648xf32>
    %c0_1 = arith.constant 0 : index
    %c0_2 = arith.constant 0 : index
    %2 = vector.load %arg4[%c0_1, %c0_2] : memref<64x1xf32, #tpu.memory_space<vmem>>, vector<64x1xf32>
    %c0_3 = arith.constant 0 : index
    %c0_4 = arith.constant 0 : index
    %3 = vector.load %arg5[%c0_3, %c0_4] : memref<32x64xf32, #tpu.memory_space<vmem>>, vector<32x64xf32>
    %c0_5 = arith.constant 0 : index
    %c0_6 = arith.constant 0 : index
    %4 = vector.load %arg6[%c0_5, %c0_6] : memref<32x1xf32, #tpu.memory_space<vmem>>, vector<32x1xf32>
    %c0_7 = arith.constant 0 : index
    %c0_8 = arith.constant 0 : index
    %5 = vector.load %arg7[%c0_7, %c0_8] : memref<3x800xf32, #tpu.memory_space<vmem>>, vector<3x800xf32>
    %c0_9 = arith.constant 0 : index
    %c0_10 = arith.constant 0 : index
    %6 = vector.load %arg8[%c0_9, %c0_10] : memref<3x1xf32, #tpu.memory_space<vmem>>, vector<3x1xf32>
    %7 = tpu.iota {dimensions = array<i32: 1>} : vector<32x20xi32>
    %c2_i32 = arith.constant 2 : i32
    %8 = vector.broadcast %c2_i32 : i32 to vector<32x20xi32>
    %9 = arith.cmpi sge, %7, %8 : vector<32x20xi32>
    %c18_i32 = arith.constant 18 : i32
    %10 = vector.broadcast %c18_i32 : i32 to vector<32x20xi32>
    %11 = arith.cmpi slt, %7, %10 : vector<32x20xi32>
    %12 = arith.andi %9, %11 : vector<32x20xi1>
    %c0_i32 = arith.constant 0 : i32
    %c20_i32 = arith.constant 20 : i32
    %13 = arith.addi %c0_i32, %c20_i32 : i32
    %c1_i32 = arith.constant 1 : i32
    scf.for %arg13 = %c0_i32 to %13 step %c1_i32  : i32 {
      %c1_i32_19 = arith.constant 1 : i32
      %16 = arith.muli %arg13, %c1_i32_19 : i32
      %c0_i32_20 = arith.constant 0 : i32
      %17 = arith.addi %c0_i32_20, %16 : i32
      %18 = arith.index_cast %17 : i32 to index
      %c0_21 = arith.constant 0 : index
      %c0_22 = arith.constant 0 : index
      %19 = vector.load %arg10[%18, %c0_21, %c0_22] : memref<20x8x28xf32, #tpu.memory_space<vmem>>, vector<1x8x28xf32>
      %20 = vector.shape_cast %19 : vector<1x8x28xf32> to vector<8x28xf32>
      %21 = vector.extract_strided_slice %20 {offsets = [0, 0], sizes = [8, 20], strides = [1, 1]} : vector<8x28xf32> to vector<8x20xf32>
      %22 = vector.extract_strided_slice %20 {offsets = [0, 1], sizes = [8, 20], strides = [1, 1]} : vector<8x28xf32> to vector<8x20xf32>
      %23 = vector.extract_strided_slice %20 {offsets = [0, 2], sizes = [8, 20], strides = [1, 1]} : vector<8x28xf32> to vector<8x20xf32>
      %24 = vector.extract_strided_slice %20 {offsets = [0, 3], sizes = [8, 20], strides = [1, 1]} : vector<8x28xf32> to vector<8x20xf32>
      %25 = vector.extract_strided_slice %20 {offsets = [0, 4], sizes = [8, 20], strides = [1, 1]} : vector<8x28xf32> to vector<8x20xf32>
      %26 = vector.extract_strided_slice %20 {offsets = [0, 5], sizes = [8, 20], strides = [1, 1]} : vector<8x28xf32> to vector<8x20xf32>
      %27 = vector.extract_strided_slice %20 {offsets = [0, 6], sizes = [8, 20], strides = [1, 1]} : vector<8x28xf32> to vector<8x20xf32>
      %28 = vector.extract_strided_slice %20 {offsets = [0, 7], sizes = [8, 20], strides = [1, 1]} : vector<8x28xf32> to vector<8x20xf32>
      %29 = vector.extract_strided_slice %20 {offsets = [0, 8], sizes = [8, 20], strides = [1, 1]} : vector<8x28xf32> to vector<8x20xf32>
      %30 = tpu.concatenate %21, %22, %23, %24, %25, %26, %27, %28, %29 in 0 : vector<8x20xf32>, vector<8x20xf32>, vector<8x20xf32>, vector<8x20xf32>, vector<8x20xf32>, vector<8x20xf32>, vector<8x20xf32>, vector<8x20xf32>, vector<8x20xf32> -> vector<72x20xf32>
      %c72_i32 = arith.constant 72 : i32
      %31 = arith.muli %17, %c72_i32 : i32
      %32 = tpu.assume_multiple %31, 8 : i32
      %33 = arith.index_cast %32 : i32 to index
      %c0_23 = arith.constant 0 : index
      %34 = vector.load %arg11[%33, %c0_23] : memref<1440x20xf32, #tpu.memory_space<vmem>>, vector<72x20xf32>
      tpu.vector_store %arg11[%33, %c0_23], %30 {strides = array<i32>} : memref<1440x20xf32, #tpu.memory_space<vmem>>, vector<72x20xf32>,
    }
    %c20_i32_11 = arith.constant 20 : i32
    %c0_i32_12 = arith.constant 0 : i32
    %c12_i32 = arith.constant 12 : i32
    %14 = arith.addi %c0_i32_12, %c12_i32 : i32
    %c1_i32_13 = arith.constant 1 : i32
    scf.for %arg13 = %c0_i32_12 to %14 step %c1_i32_13  : i32 {
      %c1_i32_19 = arith.constant 1 : i32
      %16 = arith.muli %arg13, %c1_i32_19 : i32
      %c0_i32_20 = arith.constant 0 : i32
      %17 = arith.addi %c0_i32_20, %16 : i32
      %c72_i32 = arith.constant 72 : i32
      %18 = arith.muli %17, %c72_i32 : i32
      %19 = tpu.assume_multiple %18, 8 : i32
      %20 = arith.index_cast %19 : i32 to index
      %c0_21 = arith.constant 0 : index
      %21 = vector.load %arg11[%20, %c0_21] : memref<1440x20xf32, #tpu.memory_space<vmem>>, vector<648x20xf32>
      %cst = arith.constant dense<0.000000e+00> : vector<64x20xf32>
      %22 = tpu.matmul %1, %21, %cst {dimension_numbers = #tpu.dot_dimension_numbers<[1], [0], [0], [1], [0, 0, 1, 1], [], []>} : vector<64x648xf32>, vector<648x20xf32>, vector<64x20xf32> -> vector<64x20xf32>
      %23 = vector.broadcast %2 : vector<64x1xf32> to vector<64x20xf32>
      %24 = arith.addf %22, %23 : vector<64x20xf32>
      %cst_22 = arith.constant 0.000000e+00 : f32
      %25 = vector.broadcast %cst_22 : f32 to vector<64x20xf32>
      %26 = arith.maximumf %24, %25 : vector<64x20xf32>
      %cst_23 = arith.constant dense<0.000000e+00> : vector<32x20xf32>
      %27 = tpu.matmul %3, %26, %cst_23 {dimension_numbers = #tpu.dot_dimension_numbers<[1], [0], [0], [1], [0, 0, 1, 1], [], []>} : vector<32x64xf32>, vector<64x20xf32>, vector<32x20xf32> -> vector<32x20xf32>
      %28 = vector.broadcast %4 : vector<32x1xf32> to vector<32x20xf32>
      %29 = arith.addf %27, %28 : vector<32x20xf32>
      %cst_24 = arith.constant 0.000000e+00 : f32
      %30 = vector.broadcast %cst_24 : f32 to vector<32x20xf32>
      %31 = arith.maximumf %29, %30 : vector<32x20xf32>
      %c2_i32_25 = arith.constant 2 : i32
      %32 = arith.subi %0, %c2_i32_25 : i32
      %33 = arith.addi %32, %17 : i32
      %c0_i32_26 = arith.constant 0 : i32
      %34 = arith.cmpi sge, %33, %c0_i32_26 : i32
      %c16_i32 = arith.constant 16 : i32
      %35 = arith.cmpi slt, %33, %c16_i32 : i32
      %36 = arith.andi %34, %35 : i1
      %37 = vector.broadcast %36 : i1 to vector<32x20xi1>
      %38 = arith.andi %37, %12 : vector<32x20xi1>
      %cst_27 = arith.constant 0.000000e+00 : f32
      %39 = vector.broadcast %cst_27 : f32 to vector<32x20xf32>
      %40 = arith.select %38, %31, %39 : vector<32x20xi1>, vector<32x20xf32>
      %41 = vector.extract_strided_slice %40 {offsets = [0, 0], sizes = [32, 16], strides = [1, 1]} : vector<32x20xf32> to vector<32x16xf32>
      %42 = vector.extract_strided_slice %40 {offsets = [0, 1], sizes = [32, 16], strides = [1, 1]} : vector<32x20xf32> to vector<32x16xf32>
      %43 = vector.extract_strided_slice %40 {offsets = [0, 2], sizes = [32, 16], strides = [1, 1]} : vector<32x20xf32> to vector<32x16xf32>
      %44 = vector.extract_strided_slice %40 {offsets = [0, 3], sizes = [32, 16], strides = [1, 1]} : vector<32x20xf32> to vector<32x16xf32>
      %45 = vector.extract_strided_slice %40 {offsets = [0, 4], sizes = [32, 16], strides = [1, 1]} : vector<32x20xf32> to vector<32x16xf32>
      %46 = tpu.concatenate %41, %42, %43, %44, %45 in 0 : vector<32x16xf32>, vector<32x16xf32>, vector<32x16xf32>, vector<32x16xf32>, vector<32x16xf32> -> vector<160x16xf32>
      %c160_i32 = arith.constant 160 : i32
      %47 = arith.muli %17, %c160_i32 : i32
      %48 = tpu.assume_multiple %47, 8 : i32
      %49 = arith.index_cast %48 : i32 to index
      %c0_28 = arith.constant 0 : index
      %50 = vector.load %arg12[%49, %c0_28] : memref<1920x16xf32, #tpu.memory_space<vmem>>, vector<160x16xf32>
      tpu.vector_store %arg12[%49, %c0_28], %46 {strides = array<i32>} : memref<1920x16xf32, #tpu.memory_space<vmem>>, vector<160x16xf32>,
    }
    %c12_i32_14 = arith.constant 12 : i32
    %c0_i32_15 = arith.constant 0 : i32
    %c8_i32_16 = arith.constant 8 : i32
    %15 = arith.addi %c0_i32_15, %c8_i32_16 : i32
    %c1_i32_17 = arith.constant 1 : i32
    scf.for %arg13 = %c0_i32_15 to %15 step %c1_i32_17  : i32 {
      %c1_i32_19 = arith.constant 1 : i32
      %16 = arith.muli %arg13, %c1_i32_19 : i32
      %c0_i32_20 = arith.constant 0 : i32
      %17 = arith.addi %c0_i32_20, %16 : i32
      %c160_i32 = arith.constant 160 : i32
      %18 = arith.muli %17, %c160_i32 : i32
      %19 = tpu.assume_multiple %18, 8 : i32
      %20 = arith.index_cast %19 : i32 to index
      %c0_21 = arith.constant 0 : index
      %21 = vector.load %arg12[%20, %c0_21] : memref<1920x16xf32, #tpu.memory_space<vmem>>, vector<800x16xf32>
      %cst = arith.constant dense<0.000000e+00> : vector<3x16xf32>
      %22 = tpu.matmul %5, %21, %cst {dimension_numbers = #tpu.dot_dimension_numbers<[1], [0], [0], [1], [0, 0, 1, 1], [], []>} : vector<3x800xf32>, vector<800x16xf32>, vector<3x16xf32> -> vector<3x16xf32>
      %23 = vector.broadcast %6 : vector<3x1xf32> to vector<3x16xf32>
      %24 = arith.addf %22, %23 : vector<3x16xf32>
      %c0_22 = arith.constant 0 : index
      %25 = arith.index_cast %17 : i32 to index
      %c0_23 = arith.constant 0 : index
      %c0_24 = arith.constant 0 : index
      %26 = vector.load %arg9[%c0_22, %25, %c0_23, %c0_24] : memref<1x8x3x16xf32, #tpu.memory_space<vmem>>, vector<1x1x3x16xf32>
      %27 = vector.shape_cast %26 : vector<1x1x3x16xf32> to vector<3x16xf32>
      %28 = vector.shape_cast %24 : vector<3x16xf32> to vector<1x1x3x16xf32>
      tpu.vector_store %arg9[%c0_22, %25, %c0_23, %c0_24], %28 {strides = array<i32>} : memref<1x8x3x16xf32, #tpu.memory_space<vmem>>, vector<1x1x3x16xf32>,
    }
    %c8_i32_18 = arith.constant 8 : i32
    return
  }
  func.func @transform_1(%arg0: i32, %arg1: i32) -> (i32, i32) {
    %c0_i32 = arith.constant 0 : i32
    %c0_i32_0 = arith.constant 0 : i32
    %c0_i32_1 = arith.constant 0 : i32
    return %c0_i32, %c0_i32_0 : i32, i32
  }
  func.func @transform_2(%arg0: i32, %arg1: i32) -> (i32, i32) {
    %c0_i32 = arith.constant 0 : i32
    %c0_i32_0 = arith.constant 0 : i32
    %c0_i32_1 = arith.constant 0 : i32
    return %c0_i32, %c0_i32_0 : i32, i32
  }
  func.func @transform_3(%arg0: i32, %arg1: i32) -> (i32, i32) {
    %c0_i32 = arith.constant 0 : i32
    %c0_i32_0 = arith.constant 0 : i32
    %c0_i32_1 = arith.constant 0 : i32
    return %c0_i32, %c0_i32_0 : i32, i32
  }
  func.func @transform_4(%arg0: i32, %arg1: i32) -> (i32, i32) {
    %c0_i32 = arith.constant 0 : i32
    %c0_i32_0 = arith.constant 0 : i32
    %c0_i32_1 = arith.constant 0 : i32
    return %c0_i32, %c0_i32_0 : i32, i32
  }
  func.func @transform_5(%arg0: i32, %arg1: i32) -> (i32, i32) {
    %c0_i32 = arith.constant 0 : i32
    %c0_i32_0 = arith.constant 0 : i32
    %c0_i32_1 = arith.constant 0 : i32
    return %c0_i32, %c0_i32_0 : i32, i32
  }
  func.func @transform_6(%arg0: i32, %arg1: i32) -> (i32, i32) {
    %c0_i32 = arith.constant 0 : i32
    %c0_i32_0 = arith.constant 0 : i32
    %c0_i32_1 = arith.constant 0 : i32
    return %c0_i32, %c0_i32_0 : i32, i32
  }
  func.func @transform_7(%arg0: i32, %arg1: i32) -> (i32, i32, i32, i32) {
    %c0_i32 = arith.constant 0 : i32
    %c0_i32_0 = arith.constant 0 : i32
    %c0_i32_1 = arith.constant 0 : i32
    return %arg0, %arg1, %c0_i32, %c0_i32_0 : i32, i32, i32, i32
  }
}

</mosaic_0001>

<bundles_post_ra>
// kernel: srcnn_forward.1
= control target key start
LH: loop header
LB: loop body
LE: loop exit
PB: predicated region body
PF: predicated region fallthrough
CT: control target
= control target key end

     0   :  { %s2387_s24 = smov 0   ;;  %s2389_s25 = smov 0   ;;  %s3185_s0 = inlined_call_operand.vmem [shape: f32[2,28,8,28], index: 0, kind: input, shape index: {}]   ;;  %s3186_s1 = inlined_call_operand.vmem [shape: f32[64,648], index: 1, kind: input, shape index: {}]   ;;  %s3187_s2 = inlined_call_operand.vmem [shape: f32[64,1], index: 2, kind: input, shape index: {}]   ;;  %s3188_s3 = inlined_call_operand.vmem [shape: f32[32,64], index: 3, kind: input, shape index: {}]   ;;  %s3189_s4 = inlined_call_operand.vmem [shape: f32[32,1], index: 4, kind: input, shape index: {}]   ;;  %s3190_s5 = inlined_call_operand.vmem [shape: f32[3,800], index: 5, kind: input, shape index: {}]   ;;  %s3191_s6 = inlined_call_operand.vmem [shape: f32[3,1], index: 6, kind: input, shape index: {}]   ;;  %s3192_s7 = inlined_call_operand.vmem [shape: f32[2,16,3,16], index: 7, kind: output, shape index: {}]  }
   0x1   :  { %s2391_s26 = smov 0   ;;  %s2393_s27 = smov 0  }
   0x2   :  { %s2395_s28 = smov 0  }
   0x3 LB: > { %s26_s29 = sadd.s32 1, %s2306_s26  ;;  %s29_s30 = sadd.s32 1, %s2310_s27  ;;  %s2314_s28 = sphi %s2395_s28, %s17_s28   ;;  %s2310_s27 = sphi %s2393_s27, %s3278_s27   ;;  %s2306_s26 = sphi %s2391_s26, %s3277_s26   ;;  %s2302_s25 = sphi %s2389_s25, %s3276_s25   ;;  %s2298_s24 = sphi %s2387_s24, %s3275_s24  }
   0x4   : > { %p27_p0 = scmp.ge.s32.totalorder %s26_s29, 2  ;;  %p1677_p1 = scmp.ge.s32.totalorder %s2314_s28, 1 }
   0x5   : > { %p217_p2 = scmp.lt.s32.totalorder %s2314_s28, 5 }
   0x6   : > { %s3280_s29 = smov (%p27_p0, %s26_s29), 0  ;;  %s3282_s30 = smov (!%p27_p0, %s29_s30), %s2310_s27 }
   0x7   : > { %p218_p3 = pnand %p1677_p1, %p217_p2  ;;  %p31_p4 = scmp.ge.s32.totalorder %s3282_s30, 2 }
   0x9   : > { %s3284_s30 = smov (%p31_p4, %s3282_s30), 0  ;;  %221 = sbr.rel (%p218_p3) target bundleno = 1183 (0x49f), region = 44 }
  0x10   : > { %s2417_s8 = sshll.u32 %s2298_s24, 3  ;;  %p247_p5 = scmp.lt.s32.totalorder %s2302_s25, 1 }
  0x11   : > { %p249_p6 = scmp.lt.s32.totalorder %s2417_s8, 15 }
  0x12   : > { %s248_s9 = scalar_select %p247_p5, %s2302_s25, 1 }
  0x13   : > { %s250_s10 = scalar_select %p249_p6, %s2417_s8, 15 }
  0x14   : > { %s1679_s11 = sshll.u32 %s248_s9, 4 }
  0x15   : > { %s252_s12 = sadd.s32 %s1679_s11, %s250_s10 }
  0x16   : > { %s1680_s13 = sshll.u32 %s252_s12, 2 }
  0x17   : > { %s2424_s16 = scalar_lea.vmem %s3192_s7, %s1680_s13 }
  0x18   : > { %s1702_s17 = sshll.u32 %s2298_s24, 6  ;;  %s258_s18 = smul.u32 224, %s2302_s25 }
  0x1a   : > { %s259_s19 = sadd.s32 %s1702_s17, %s258_s18 }
  0x1b   : > { %s2429_s22 = scalar_lea.vmem %s3185_s0, %s259_s19 }
  0x1c   : > { %v293_v0 = vld [vmem:[%s2429_s22] sm:$0xff]  ;;  %v295_v1 = vld [vmem:[%s2429_s22 + $0x8] sm:$0xff]  ;;  %v297_v2 = vld [vmem:[%s2429_s22 + $0x10] sm:$0xff] }
  0x1d   : > { %294 = vst [vmem:[#allocation2] sm:$0xff] %v293_v0  ;;  %296 = vst [vmem:[#allocation2 + $0x8] sm:$0xff] %v295_v1  ;;  %v299_v3 = vld [vmem:[%s2429_s22 + $0x18] sm:$0xff]  ;;  %v301_v4 = vld [vmem:[%s2429_s22 + $0x20] sm:$0xff] }
  0x1e   : > { %298 = vst [vmem:[#allocation2 + $0x10] sm:$0xff] %v297_v2  ;;  %v303_v5 = vld [vmem:[%s2429_s22 + $0x28] sm:$0xff]  ;;  %300 = vst [vmem:[#allocation2 + $0x18] sm:$0xff] %v299_v3  ;;  %v305_v6 = vld [vmem:[%s2429_s22 + $0x30] sm:$0xff] }
  0x1f   : > { %302 = vst [vmem:[#allocation2 + $0x20] sm:$0xff] %v301_v4  ;;  %304 = vst [vmem:[#allocation2 + $0x28] sm:$0xff] %v303_v5  ;;  %v307_v7 = vld [vmem:[%s2429_s22 + $0x38] sm:$0xff]  ;;  %v309_v8 = vld [vmem:[%s2429_s22 + $0x40] sm:$0xff] }
  0x20   : > { %306 = vst [vmem:[#allocation2 + $0x30] sm:$0xff] %v305_v6  ;;  %308 = vst [vmem:[#allocation2 + $0x38] sm:$0xff] %v307_v7  ;;  %v311_v9 = vld [vmem:[%s2429_s22 + $0x48] sm:$0xff]  ;;  %v313_v10 = vld [vmem:[%s2429_s22 + $0x50] sm:$0xff] }
  0x21   : > { %310 = vst [vmem:[#allocation2 + $0x40] sm:$0xff] %v309_v8  ;;  %v315_v11 = vld [vmem:[%s2429_s22 + $0x58] sm:$0xff]  ;;  %312 = vst [vmem:[#allocation2 + $0x48] sm:$0xff] %v311_v9  ;;  %v317_v12 = vld [vmem:[%s2429_s22 + $0x60] sm:$0xff] }
  0x22   : > { %314 = vst [vmem:[#allocation2 + $0x50] sm:$0xff] %v313_v10  ;;  %316 = vst [vmem:[#allocation2 + $0x58] sm:$0xff] %v315_v11  ;;  %v319_v13 = vld [vmem:[%s2429_s22 + $0x68] sm:$0xff]  ;;  %v321_v14 = vld [vmem:[%s2429_s22 + $0x70] sm:$0xff] }
  0x23   : > { %318 = vst [vmem:[#allocation2 + $0x60] sm:$0xff] %v317_v12  ;;  %320 = vst [vmem:[#allocation2 + $0x68] sm:$0xff] %v319_v13  ;;  %v323_v15 = vld [vmem:[%s2429_s22 + $0x78] sm:$0xff]  ;;  %v325_v16 = vld [vmem:[%s2429_s22 + $0x80] sm:$0xff] }
  0x24   : > { %322 = vst [vmem:[#allocation2 + $0x70] sm:$0xff] %v321_v14  ;;  %v327_v17 = vld [vmem:[%s2429_s22 + $0x88] sm:$0xff]  ;;  %324 = vst [vmem:[#allocation2 + $0x78] sm:$0xff] %v323_v15  ;;  %v329_v18 = vld [vmem:[%s2429_s22 + $0x90] sm:$0xff] }
  0x25   : > { %326 = vst [vmem:[#allocation2 + $0x80] sm:$0xff] %v325_v16  ;;  %328 = vst [vmem:[#allocation2 + $0x88] sm:$0xff] %v327_v17  ;;  %v331_v19 = vld [vmem:[%s2429_s22 + $0x98] sm:$0xff] }
  0x26   : > { %330 = vst [vmem:[#allocation2 + $0x90] sm:$0xff] %v329_v18  ;;  %332 = vst [vmem:[#allocation2 + $0x98] sm:$0xff] %v331_v19 }
  0x27   : > { %340 = vsyncadd [#allocation5], 2560 }
  0x28   : > { %2294 = dma.done.wait [#allocation5], 2560 }
  0x29   : > { %2295 = vsyncadd [#allocation5], 4294964736  ;;  %v2454_v20 = vld [vmem:[%s3186_s1] sm:$0xff]  ;;  %v2459_v21 = vld [vmem:[%s3186_s1 + $0x8] sm:$0xff]  ;;  %v414_v59 = vlaneseq  ;;  %s2800_s17 = smov 0  }
  0x2a   : > { %3197 = vst [vmem:[#allocation8_spill] sm:$0xff] %v2454_v20  ;;  %3198 = vst [vmem:[#allocation9_spill] sm:$0xff] %v2459_v21  ;;  %v2464_v22 = vld [vmem:[%s3186_s1 + $0x10] sm:$0xff]  ;;  %v2469_v23 = vld [vmem:[%s3186_s1 + $0x18] sm:$0xff] }
  0x2b   : > { %3199 = vst [vmem:[#allocation10_spill] sm:$0xff] %v2464_v22  ;;  %3200 = vst [vmem:[#allocation11_spill] sm:$0xff] %v2469_v23  ;;  %v2474_v24 = vld [vmem:[%s3186_s1 + $0x20] sm:$0xff]  ;;  %v2479_v25 = vld [vmem:[%s3186_s1 + $0x28] sm:$0xff]  ;;  %v415_v8 = vand.u32 127, %v414_v59 }
  0x2c   : > { %3201 = vst [vmem:[#allocation12_spill] sm:$0xff] %v2474_v24  ;;  %3202 = vst [vmem:[#allocation13_spill] sm:$0xff] %v2479_v25  ;;  %v2484_v26 = vld [vmem:[%s3186_s1 + $0x30] sm:$0xff]  ;;  %v2489_v27 = vld [vmem:[%s3186_s1 + $0x38] sm:$0xff] }
  0x2d   : > { %v2494_v28 = vld [vmem:[%s3186_s1 + $0x40] sm:$0xff]  ;;  %v2499_v29 = vld [vmem:[%s3186_s1 + $0x48] sm:$0xff]  ;;  %v2504_v30 = vld [vmem:[%s3186_s1 + $0x50] sm:$0xff]  ;;  %vm416_vm0 = vcmp.ge.s32.totalorder %v415_v8, 2  ;;  %vm417_vm1 = vcmp.lt.s32.totalorder %v415_v8, 18 }
  0x2e   : > { %v2509_v31 = vld [vmem:[%s3186_s1 + $0x58] sm:$0xff]  ;;  %v2514_v32 = vld [vmem:[%s3186_s1 + $0x60] sm:$0xff]  ;;  %v2519_v33 = vld [vmem:[%s3186_s1 + $0x68] sm:$0xff] }
  0x2f   : > { %v2524_v34 = vld [vmem:[%s3186_s1 + $0x70] sm:$0xff]  ;;  %v2529_v35 = vld [vmem:[%s3186_s1 + $0x78] sm:$0xff]  ;;  %v2534_v36 = vld [vmem:[%s3186_s1 + $0x80] sm:$0xff] }
  0x30   : > { %v2539_v37 = vld [vmem:[%s3186_s1 + $0x88] sm:$0xff]  ;;  %v2544_v38 = vld [vmem:[%s3186_s1 + $0x90] sm:$0xff]  ;;  %v2549_v39 = vld [vmem:[%s3186_s1 + $0x98] sm:$0xff] }
  0x31   : > { %v2554_v40 = vld [vmem:[%s3186_s1 + $0xa0] sm:$0xff]  ;;  %v2559_v41 = vld [vmem:[%s3186_s1 + $0xa8] sm:$0xff]  ;;  %v2564_v42 = vld [vmem:[%s3186_s1 + $0xb0] sm:$0xff] }
  0x32   : > { %v2569_v43 = vld [vmem:[%s3186_s1 + $0xb8] sm:$0xff]  ;;  %v2574_v44 = vld [vmem:[%s3186_s1 + $0xc0] sm:$0xff]  ;;  %v2579_v45 = vld [vmem:[%s3186_s1 + $0xc8] sm:$0xff] }
  0x33   : > { %v2584_v46 = vld [vmem:[%s3186_s1 + $0xd0] sm:$0xff]  ;;  %v2589_v47 = vld [vmem:[%s3186_s1 + $0xd8] sm:$0xff]  ;;  %v2594_v48 = vld [vmem:[%s3186_s1 + $0xe0] sm:$0xff] }
  0x34   : > { %3203 = vst [vmem:[#allocation14_spill] sm:$0xff] %v2594_v48  ;;  %v2599_v49 = vld [vmem:[%s3186_s1 + $0xe8] sm:$0xff]  ;;  %v2604_v50 = vld [vmem:[%s3186_s1 + $0xf0] sm:$0xff]  ;;  %v2609_v51 = vld [vmem:[%s3186_s1 + $0xf8] sm:$0xff] }
  0x35   : > { %v2614_v52 = vld [vmem:[%s3186_s1 + $0x100] sm:$0xff]  ;;  %v2619_v53 = vld [vmem:[%s3186_s1 + $0x108] sm:$0xff]  ;;  %v2624_v54 = vld [vmem:[%s3186_s1 + $0x110] sm:$0xff] }
  0x36   : > { %3204 = vst [vmem:[#allocation15_spill] sm:$0xff] %v2624_v54  ;;  %v2629_v55 = vld [vmem:[%s3186_s1 + $0x118] sm:$0xff]  ;;  %v2634_v56 = vld [vmem:[%s3186_s1 + $0x120] sm:$0xff]  ;;  %v2639_v57 = vld [vmem:[%s3186_s1 + $0x128] sm:$0xff] }
  0x37   : > { %3205 = vst [vmem:[#allocation16_spill] sm:$0xff] %v2629_v55  ;;  %v2644_v58 = vld [vmem:[%s3186_s1 + $0x130] sm:$0xff]  ;;  %v2649_v60 = vld [vmem:[%s3186_s1 + $0x138] sm:$0xff]  ;;  %v2654_v61 = vld [vmem:[%s3186_s1 + $0x140] sm:$0xff] }
  0x38   : > { %3206 = vst [vmem:[#allocation17_spill] sm:$0xff] %v2654_v61  ;;  %v2659_v62 = vld [vmem:[%s3186_s1 + $0x148] sm:$0xff]  ;;  %v2664_v63 = vld [vmem:[%s3186_s1 + $0x150] sm:$0xff]  ;;  %v2669_v0 = vld [vmem:[%s3186_s1 + $0x158] sm:$0xff] }
  0x39   : > { %3207 = vst [vmem:[#allocation18_spill] sm:$0xff] %v2659_v62  ;;  %3208 = vst [vmem:[#allocation19_spill] sm:$0xff] %v2669_v0  ;;  %v2674_v1 = vld [vmem:[%s3186_s1 + $0x160] sm:$0xff]  ;;  %v2679_v2 = vld [vmem:[%s3186_s1 + $0x168] sm:$0xff] }
  0x3a   : > { %3209 = vst [vmem:[#allocation20_spill] sm:$0xff] %v2674_v1  ;;  %3210 = vst [vmem:[#allocation21_spill] sm:$0xff] %v2679_v2  ;;  %v2684_v3 = vld [vmem:[%s3186_s1 + $0x170] sm:$0xff]  ;;  %v2689_v4 = vld [vmem:[%s3186_s1 + $0x178] sm:$0xff] }
  0x3b   : > { %3211 = vst [vmem:[#allocation22_spill] sm:$0xff] %v2684_v3  ;;  %3212 = vst [vmem:[#allocation23_spill] sm:$0xff] %v2689_v4  ;;  %v2694_v5 = vld [vmem:[%s3187_s2] sm:$0xff]  ;;  %v2699_v6 = vld [vmem:[%s3187_s2 + $0x8] sm:$0xff] }
  0x3c   : > { %3213 = vst [vmem:[#allocation24_spill] sm:$0xff] %v2694_v5  ;;  %3214 = vst [vmem:[#allocation25_spill] sm:$0xff] %v2699_v6  ;;  %v2704_v7 = vld [vmem:[%s3187_s2 + $0x10] sm:$0xff]  ;;  %v2709_v9 = vld [vmem:[%s3187_s2 + $0x18] sm:$0xff] }
  0x3d   : > { %3215 = vst [vmem:[#allocation26_spill] sm:$0xff] %v2704_v7  ;;  %3216 = vst [vmem:[#allocation27_spill] sm:$0xff] %v2709_v9  ;;  %v2714_v10 = vld [vmem:[%s3187_s2 + $0x20] sm:$0xff]  ;;  %v2719_v11 = vld [vmem:[%s3187_s2 + $0x28] sm:$0xff] }
  0x3e   : > { %3217 = vst [vmem:[#allocation28_spill] sm:$0xff] %v2714_v10  ;;  %3218 = vst [vmem:[#allocation29_spill] sm:$0xff] %v2719_v11  ;;  %v2724_v12 = vld [vmem:[%s3187_s2 + $0x30] sm:$0xff]  ;;  %v2729_v13 = vld [vmem:[%s3187_s2 + $0x38] sm:$0xff] }
  0x3f   : > { %3219 = vst [vmem:[#allocation30_spill] sm:$0xff] %v2724_v12  ;;  %3220 = vst [vmem:[#allocation31_spill] sm:$0xff] %v2729_v13  ;;  %v2734_v14 = vld [vmem:[%s3188_s3] sm:$0xff]  ;;  %v2739_v15 = vld [vmem:[%s3188_s3 + $0x8] sm:$0xff] }
  0x40   : > { %3221 = vst [vmem:[#allocation32_spill] sm:$0xff] %v2734_v14  ;;  %3222 = vst [vmem:[#allocation33_spill] sm:$0xff] %v2739_v15  ;;  %v2744_v16 = vld [vmem:[%s3188_s3 + $0x10] sm:$0xff]  ;;  %v2749_v17 = vld [vmem:[%s3188_s3 + $0x18] sm:$0xff] }
  0x41   : > { %3223 = vst [vmem:[#allocation34_spill] sm:$0xff] %v2744_v16  ;;  %3224 = vst [vmem:[#allocation35_spill] sm:$0xff] %v2749_v17  ;;  %v2754_v18 = vld [vmem:[%s3189_s4] sm:$0xff]  ;;  %v2759_v19 = vld [vmem:[%s3189_s4 + $0x8] sm:$0xff] }
  0x42   : > { %3225 = vst [vmem:[#allocation36_spill] sm:$0xff] %v2754_v18  ;;  %3226 = vst [vmem:[#allocation37_spill] sm:$0xff] %v2759_v19  ;;  %v2764_v59 = vld [vmem:[%s3189_s4 + $0x10] sm:$0xff]  ;;  %v2769_v17 = vld [vmem:[%s3189_s4 + $0x18] sm:$0xff] }
  0x43   : > { %3227 = vst [vmem:[#allocation38_spill] sm:$0xff] %v2769_v17  ;;  %v2774_v16 = vld [vmem:[%s3190_s5] sm:$0x77]  ;;  %v2779_v15 = vld [vmem:[%s3190_s5 + $0x8] sm:$0x77]  ;;  %vm2796_vm2 = vmand %vm416_vm0, %vm417_vm1 }
  0x44   : > { %3228 = vst [vmem:[#allocation39_spill] sm:$0xff] %v2774_v16  ;;  %3229 = vst [vmem:[#allocation40_spill] sm:$0xff] %v2779_v15  ;;  %v2784_v14 = vld [vmem:[%s3190_s5 + $0x10] sm:$0x77]  ;;  %v2789_v8 = vld [vmem:[%s3190_s5 + $0x18] sm:$0x7] }
  0x45   : > { %3230 = vst [vmem:[#allocation41_spill] sm:$0xff] %v2784_v14  ;;  %3231 = vst [vmem:[#allocation42_spill] sm:$0xff] %v2789_v8  ;;  %v2794_v3 = vld [vmem:[%s3191_s6] sm:$0x7]  ;;  %v3233_v16 = vmov 0 }
  0x46   : > { %3232 = vst [vmem:[#allocation43_spill] sm:$0xff] %v2794_v3  ;;  %v3234_v16 = vsel %vm2796_vm2, 4294967295, %v3233_v16 }
  0x47   : > { %3235 = vst [vmem:[#allocation44_spill] sm:$0xff] %v3234_v16 }
  0x48 LB: >> { %s1683_s18 = sshll.u32 %s2318_s17, 3  ;;  %s453_s19 = smul.u32 72, %s2318_s17  ;;  %vm455_vm3 = vcmask 162816   ;;  %s2318_s17 = sphi %s2800_s17, %s424_s17  }
  0x49   : >> { %s426_s20 = scalar_lea.vmem [#allocation2], %s1683_s18  ;;  %s2328_s21 = smov 125  }
  0x4a   : >> { %v427_v8 = vld [vmem:[%s426_s20] sm:$0xff]  ;;  %s2329_s22 = smov 127   ;;  %s454_s23 = scalar_lea.vmem [#allocation3], %s453_s19 }
  0x4b   : >> { %435 = vrot.lane.b32.xlu1 %v427_v8, %s2328_s21  ;;  %429 = vrot.lane.b32.xlu0 %v427_v8, %s2329_s22  ;;  %456 = vst.msk [vmem:[%s454_s23] sm:$0xff] %vm455_vm3, %v427_v8  ;;  %s2330_s24 = smov 124   ;;  %s2331_s25 = smov 126  }
  0x4c   : >> { %s2332_s9 = smov 122   ;;  %s2333_s10 = smov 123  }
  0x4d   : >> { %s2334_s11 = smov 120   ;;  %s2335_s12 = smov 121  }
  0x4e   : >> { %s424_s17 = sadd.s32 1, %s2318_s17  }
  0x4f   : >> { %438 = vrot.lane.b32.xlu1 %v427_v8, %s2330_s24  ;;  %432 = vrot.lane.b32.xlu0 %v427_v8, %s2331_s25  ;;  %p421_p7 = scmp.ge.s32.totalorder %s424_s17, 20  }
  0x50   : > { %s2819_s13 = smov (%p421_p7), 0  }
  0x53   : >> { %444 = vrot.lane.b32.xlu1 %v427_v8, %s2332_s9  ;;  %441 = vrot.lane.b32.xlu0 %v427_v8, %s2333_s10 }
  0x57   : >> { %450 = vrot.lane.b32.xlu1 %v427_v8, %s2334_s11  ;;  %447 = vrot.lane.b32.xlu0 %v427_v8, %s2335_s12 }
  0xbd   : >> { %v436_v14 = vpop.permute.xlu1 %435  ;;  %v430_v3 = vpop.permute.xlu0 %429 }
  0xbe   : >> { %459 = vst.msk [vmem:[%s454_s23 + $0x18] sm:$0xff] %vm455_vm3, %v436_v14  ;;  %457 = vst.msk [vmem:[%s454_s23 + $0x8] sm:$0xff] %vm455_vm3, %v430_v3 }
  0xc1   : >> { %v439_v15 = vpop.permute.xlu1 %438  ;;  %v433_v16 = vpop.permute.xlu0 %432 }
  0xc2   : >> { %460 = vst.msk [vmem:[%s454_s23 + $0x20] sm:$0xff] %vm455_vm3, %v439_v15  ;;  %458 = vst.msk [vmem:[%s454_s23 + $0x10] sm:$0xff] %vm455_vm3, %v433_v16 }
  0xc4   : > { %423 = sbr.rel (!%p421_p7) target bundleno = 72 (0x48), region = 142 }
  0xc5   : >> { %v445_v4 = vpop.permute.xlu1 %444  ;;  %v442_v61 = vpop.permute.xlu0 %441 }
  0xc6   : >> { %462 = vst.msk [vmem:[%s454_s23 + $0x30] sm:$0xff] %vm455_vm3, %v445_v4  ;;  %461 = vst.msk [vmem:[%s454_s23 + $0x28] sm:$0xff] %vm455_vm3, %v442_v61 }
  0xc9   : >> { %v451_v62 = vpop.permute.xlu1 %450  ;;  %v448_v8 = vpop.permute.xlu0 %447 }
  0xca   : >> { %464 = vst.msk [vmem:[%s454_s23 + $0x40] sm:$0xff] %vm455_vm3, %v451_v62  ;;  %463 = vst.msk [vmem:[%s454_s23 + $0x38] sm:$0xff] %vm455_vm3, %v448_v8 }
  0xcb LB: >> { %v3236_v21 = vld [vmem:[#allocation9_spill] sm:$0xff]  ;;  %v3237_v23 = vld [vmem:[#allocation11_spill] sm:$0xff]  ;;  %v2336_v61 = vmov 0   ;;  %s471_s14 = smul.u32 72, %s2322_s13  ;;  %v3238_v5 = vld [vmem:[#allocation24_spill] sm:$0xff]  ;;  %vm594_vm4 = vcmask 64512   ;;  %s2322_s13 = sphi %s2819_s13, %s470_s13  }
  0xcc   : >> { %683 = vmatprep.mubr.f32.mxu0 %v3236_v21  ;;  %788 = vmatprep.mubr.f32.mxu1 %v3237_v23  ;;  %v3239_v7 = vld [vmem:[#allocation26_spill] sm:$0xff]  ;;  %v3240_v6 = vld [vmem:[#allocation25_spill] sm:$0xff]  ;;  %v3241_v9 = vld [vmem:[#allocation27_spill] sm:$0xff]  ;;  %vm962_vm5 = vcmask 523264   ;;  %s1696_s17 = sadd.s32 4294967294, %s2417_s8  ;;  %s1130_s20 = smul.u32 160, %s2322_s13 }
  0xcd   : >> { %2259 = vset.pattern.permute.xlu0 %v2336_v61  ;;  %2260 = vset.pattern.permute.xlu1 %v2336_v61  ;;  %s2829_s15 = scalar_lea.vmem [#allocation3], %s471_s14  ;;  %v3242_v10 = vld [vmem:[#allocation28_spill] sm:$0xff]  ;;  %v3243_v11 = vld [vmem:[#allocation29_spill] sm:$0xff]  ;;  %v3244_v12 = vld [vmem:[#allocation30_spill] sm:$0xff]  ;;  %s1065_s18 = sadd.s32 %s2322_s13, %s1696_s17  ;;  %vm1132_vm8 = vcmask 130048  }
  0xce   : >> { %556 = vperm.xlu0 %2259, %v3238_v5   ;;  %566 = vperm.xlu1 %2260, %v3239_v7   ;;  %v3245_v13 = vld [vmem:[#allocation31_spill] sm:$0xff]  ;;  %v3246_v18 = vld [vmem:[#allocation36_spill] sm:$0xff]  ;;  %v3247_v19 = vld [vmem:[#allocation37_spill] sm:$0xff]  ;;  %p1066_p8 = scmp.ge.s32.totalorder %s1065_s18, 0  ;;  %p1067_p9 = scmp.lt.s32.totalorder %s1065_s18, 16 }
  0xcf   : >> { %v3248_v17 = vld [vmem:[#allocation38_spill] sm:$0xff]  ;;  %v3249_v20 = vld [vmem:[#allocation8_spill] sm:$0xff]  ;;  %v3251_v0 = vld [vmem:[#allocation19_spill] sm:$0xff]  ;;  %s2995_s21 = scalar_lea.vmem [#allocation4], %s1130_s20  ;;  %s2339_s22 = smov 127  }
  0xd0   : >> { %v3250_v22 = vld [vmem:[#allocation10_spill] sm:$0xff]  ;;  %v3252_v2 = vld [vmem:[#allocation21_spill] sm:$0xff]  ;;  %v3253_v1 = vld [vmem:[#allocation20_spill] sm:$0xff]  ;;  %p1068_p10 = pnand %p1067_p9, %p1066_p8  ;;  %s2340_s23 = smov 126  }
  0xd1   : >> { %v489_v62 = vld [vmem:[%s2829_s15 + $0x80] sm:$0xff]  ;;  %v490_v3 = vld [vmem:[%s2829_s15 + $0x88] sm:$0xff]  ;;  %v491_v23 = vld [vmem:[%s2829_s15 + $0x90] sm:$0xff]  ;;  %s2341_s24 = smov 125   ;;  %s2342_s25 = smov 124  }
  0xd2   : >> { %v473_v4 = vld [vmem:[%s2829_s15] sm:$0xff]  ;;  %v1970_v14 = vpack.c.bf16 %v490_v3, %v489_v62  ;;  %v474_v15 = vld [vmem:[%s2829_s15 + $0x8] sm:$0xff]  ;;  %561 = vperm.xlu0 %2259, %v3240_v6   ;;  %571 = vperm.xlu1 %2260, %v3241_v9   ;;  %v492_v3 = vld [vmem:[%s2829_s15 + $0x98] sm:$0xff]  ;;  %s1697_s19 = scalar_select %p1068_p10, 0, 1 }
  0xd3   : >> { %v521_v16 = vld [vmem:[%s2829_s15 + $0x180] sm:$0xff]  ;;  %v522_v8 = vld [vmem:[%s2829_s15 + $0x188] sm:$0xff]  ;;  %v1972_v61 = vpack.c.bf16 %v474_v15, %v473_v4  ;;  %v475_v54 = vld [vmem:[%s2829_s15 + $0x10] sm:$0xff]  ;;  %v1974_v6 = vpack.c.bf16 %v492_v3, %v491_v23  ;;  %s470_s13 = sadd.s32 1, %s2322_s13  }
  0xd4   : >> { %v2002_v5 = vpack.c.bf16 %v522_v8, %v521_v16  ;;  %v505_v7 = vld [vmem:[%s2829_s15 + $0x100] sm:$0xff]  ;;  %v506_v21 = vld [vmem:[%s2829_s15 + $0x108] sm:$0xff]  ;;  %1971 = vmatprep.subr.bf16.mxu0 %v1970_v14  ;;  %v476_v55 = vld [vmem:[%s2829_s15 + $0x18] sm:$0xff]  ;;  %p467_p11 = scmp.ge.s32.totalorder %s470_s13, 12  }
  0xd5   : >> { %v2004_v62 = vpack.c.bf16 %v506_v21, %v505_v7  ;;  %1973 = vmatpush3.bf16.msra.mxu0 %v1972_v61  ;;  %v1976_v4 = vpack.c.bf16 %v476_v55, %v475_v54  ;;  %v523_v15 = vld [vmem:[%s2829_s15 + $0x190] sm:$0xff]  ;;  %v524_v16 = vld [vmem:[%s2829_s15 + $0x198] sm:$0xff]  ;;  %v493_v21 = vld [vmem:[%s2829_s15 + $0xa0] sm:$0xff]  ;;  %s3046_s9 = smov (%p467_p11), 0  }
  0xd6   : >> { %2003 = vmatprep.subr.bf16.mxu1 %v2002_v5  ;;  %v507_v8 = vld [vmem:[%s2829_s15 + $0x110] sm:$0xff]  ;;  %v2006_v14 = vpack.c.bf16 %v524_v16, %v523_v15  ;;  %v508_v9 = vld [vmem:[%s2829_s15 + $0x118] sm:$0xff]  ;;  %v494_v7 = vld [vmem:[%s2829_s15 + $0xa8] sm:$0xff]  ;;  %576 = vperm.xlu0 %2259, %v3242_v10  }
  0xd7   : >> { %2005 = vmatpush3.bf16.msra.mxu1 %v2004_v62  ;;  %1975 = vmatprep.subr.bf16.mxu0 %v1974_v6  ;;  %v2008_v23 = vpack.c.bf16 %v508_v9, %v507_v8  ;;  %v1978_v5 = vpack.c.bf16 %v494_v7, %v493_v21  ;;  %v477_v54 = vld [vmem:[%s2829_s15 + $0x20] sm:$0xff]  ;;  %v478_v55 = vld [vmem:[%s2829_s15 + $0x28] sm:$0xff]  ;;  %v495_v9 = vld [vmem:[%s2829_s15 + $0xb0] sm:$0xff] }
  0xd8   : >> { %v525_v61 = vld [vmem:[%s2829_s15 + $0x1a0] sm:$0xff]  ;;  %581 = vperm.xlu1 %2260, %v3243_v11   ;;  %2007 = vmatprep.subr.bf16.mxu1 %v2006_v14  ;;  %v526_v62 = vld [vmem:[%s2829_s15 + $0x1a8] sm:$0xff]  ;;  %v1980_v16 = vpack.c.bf16 %v478_v55, %v477_v54  ;;  %v496_v8 = vld [vmem:[%s2829_s15 + $0xb8] sm:$0xff] }
  0xd9   : >> { %v509_v3 = vld [vmem:[%s2829_s15 + $0x120] sm:$0xff]  ;;  %v510_v15 = vld [vmem:[%s2829_s15 + $0x128] sm:$0xff]  ;;  %1977 = vmatpush3.bf16.msra.mxu0 %v1976_v4  ;;  %v2010_v6 = vpack.c.bf16 %v526_v62, %v525_v61  ;;  %v479_v21 = vld [vmem:[%s2829_s15 + $0x30] sm:$0xff]  ;;  %v1982_v14 = vpack.c.bf16 %v496_v8, %v495_v9 }
  0xda   : >> { %1979 = vmatprep.subr.bf16.mxu0 %v1978_v5  ;;  %v2012_v7 = vpack.c.bf16 %v510_v15, %v509_v3  ;;  %v480_v10 = vld [vmem:[%s2829_s15 + $0x38] sm:$0xff]  ;;  %v527_v11 = vld [vmem:[%s2829_s15 + $0x1b0] sm:$0xff]  ;;  %v497_v61 = vld [vmem:[%s2829_s15 + $0xc0] sm:$0xff]  ;;  %586 = vperm.xlu0 %2259, %v3244_v12  }
  0xdb   : >> { %2009 = vmatpush3.bf16.msra.mxu1 %v2008_v23  ;;  %v528_v48 = vld [vmem:[%s2829_s15 + $0x1b8] sm:$0xff]  ;;  %v511_v54 = vld [vmem:[%s2829_s15 + $0x130] sm:$0xff]  ;;  %v498_v23 = vld [vmem:[%s2829_s15 + $0xc8] sm:$0xff]  ;;  %v1984_v5 = vpack.c.bf16 %v480_v10, %v479_v21 }
  0xdc   : >> { %2011 = vmatprep.subr.bf16.mxu1 %v2010_v6  ;;  %v2014_v4 = vpack.c.bf16 %v528_v48, %v527_v11  ;;  %v512_v55 = vld [vmem:[%s2829_s15 + $0x138] sm:$0xff]  ;;  %591 = vperm.xlu1 %2260, %v3245_v13   ;;  %v529_v62 = vld [vmem:[%s2829_s15 + $0x1c0] sm:$0xff]  ;;  %v530_v3 = vld [vmem:[%s2829_s15 + $0x1c8] sm:$0xff]  ;;  %v1986_v11 = vpack.c.bf16 %v498_v23, %v497_v61 }
  0xdd   : >> { %1981 = vmatpush3.bf16.msra.mxu0 %v1980_v16  ;;  %v2016_v48 = vpack.c.bf16 %v512_v55, %v511_v54  ;;  %v481_v15 = vld [vmem:[%s2829_s15 + $0x40] sm:$0xff]  ;;  %v482_v6 = vld [vmem:[%s2829_s15 + $0x48] sm:$0xff]  ;;  %v2018_v8 = vpack.c.bf16 %v530_v3, %v529_v62  ;;  %v499_v13 = vld [vmem:[%s2829_s15 + $0xd0] sm:$0xff] }
  0xde   : >> { %1983 = vmatprep.subr.bf16.mxu0 %v1982_v14  ;;  %v513_v9 = vld [vmem:[%s2829_s15 + $0x140] sm:$0xff]  ;;  %v514_v12 = vld [vmem:[%s2829_s15 + $0x148] sm:$0xff]  ;;  %v500_v16 = vld [vmem:[%s2829_s15 + $0xd8] sm:$0xff]  ;;  %944 = vperm.xlu0 %2259, %v3246_v18  }
  0xdf   : >> { %2013 = vmatpush3.bf16.msra.mxu1 %v2012_v7  ;;  %v531_v10 = vld [vmem:[%s2829_s15 + $0x1d0] sm:$0xff]  ;;  %v532_v21 = vld [vmem:[%s2829_s15 + $0x1d8] sm:$0xff]  ;;  %v1988_v7 = vpack.c.bf16 %v482_v6, %v481_v15  ;;  %v2020_v14 = vpack.c.bf16 %v514_v12, %v513_v9  ;;  %v501_v3 = vld [vmem:[%s2829_s15 + $0xe0] sm:$0xff] }
  0xe0   : >> { %2015 = vmatprep.subr.bf16.mxu1 %v2014_v4  ;;  %949 = vperm.xlu1 %2260, %v3247_v19   ;;  %v1990_v4 = vpack.c.bf16 %v500_v16, %v499_v13  ;;  %v483_v54 = vld [vmem:[%s2829_s15 + $0x50] sm:$0xff]  ;;  %v484_v55 = vld [vmem:[%s2829_s15 + $0x58] sm:$0xff]  ;;  %v2022_v23 = vpack.c.bf16 %v532_v21, %v531_v10  ;;  %v502_v18 = vld [vmem:[%s2829_s15 + $0xe8] sm:$0xff] }
  0xe1   : >> { %1985 = vmatpush3.bf16.msra.mxu0 %v1984_v5  ;;  %v515_v61 = vld [vmem:[%s2829_s15 + $0x150] sm:$0xff]  ;;  %v516_v62 = vld [vmem:[%s2829_s15 + $0x158] sm:$0xff]  ;;  %v533_v5 = vld [vmem:[%s2829_s15 + $0x1e0] sm:$0xff]  ;;  %v1992_v12 = vpack.c.bf16 %v484_v55, %v483_v54 }
  0xe2   : >> { %1987 = vmatprep.subr.bf16.mxu0 %v1986_v11  ;;  %954 = vperm.xlu0 %2259, %v2764_v59   ;;  %v2024_v13 = vpack.c.bf16 %v516_v62, %v515_v61  ;;  %v1994_v11 = vpack.c.bf16 %v502_v18, %v501_v3  ;;  %v485_v15 = vld [vmem:[%s2829_s15 + $0x60] sm:$0xff]  ;;  %v486_v6 = vld [vmem:[%s2829_s15 + $0x68] sm:$0xff]  ;;  %v503_v10 = vld [vmem:[%s2829_s15 + $0xf0] sm:$0xff] }
  0xe3   : >> { %2017 = vmatpush3.bf16.msra.mxu1 %v2016_v48  ;;  %v534_v48 = vld [vmem:[%s2829_s15 + $0x1e8] sm:$0xff]  ;;  %v517_v9 = vld [vmem:[%s2829_s15 + $0x160] sm:$0xff]  ;;  %v504_v21 = vld [vmem:[%s2829_s15 + $0xf8] sm:$0xff] }
  0xe4   : >> { %2019 = vmatprep.subr.bf16.mxu1 %v2018_v8  ;;  %959 = vperm.xlu1 %2260, %v3248_v17   ;;  %v2026_v8 = vpack.c.bf16 %v534_v48, %v533_v5  ;;  %v518_v16 = vld [vmem:[%s2829_s15 + $0x168] sm:$0xff]  ;;  %v535_v17 = vld [vmem:[%s2829_s15 + $0x1f0] sm:$0xff]  ;;  %v536_v19 = vld [vmem:[%s2829_s15 + $0x1f8] sm:$0xff] }
  0xe5   : >> { %1989 = vmatpush3.bf16.msra.mxu0 %v1988_v7  ;;  %v1996_v7 = vpack.c.bf16 %v486_v6, %v485_v15  ;;  %v2028_v18 = vpack.c.bf16 %v518_v16, %v517_v9  ;;  %v488_v54 = vld [vmem:[%s2829_s15 + $0x78] sm:$0xff]  ;;  %v2030_v55 = vpack.c.bf16 %v536_v19, %v535_v17  ;;  %v519_v61 = vld [vmem:[%s2829_s15 + $0x170] sm:$0xff]  ;;  %v537_v5 = vld [vmem:[%s2829_s15 + $0x200] sm:$0xff] }
  0xe6   : >> { %1991 = vmatprep.subr.bf16.mxu0 %v1990_v4  ;;  %v487_v4 = vld [vmem:[%s2829_s15 + $0x70] sm:$0xff]  ;;  %v538_v48 = vld [vmem:[%s2829_s15 + $0x208] sm:$0xff]  ;;  %v540_v19 = vld [vmem:[%s2829_s15 + $0x218] sm:$0xff] }
  0xe7   : >> { %2021 = vmatpush3.bf16.msra.mxu1 %v2020_v14  ;;  %v1998_v14 = vpack.c.bf16 %v504_v21, %v503_v10  ;;  %v2000_v62 = vpack.c.bf16 %v488_v54, %v487_v4  ;;  %v539_v17 = vld [vmem:[%s2829_s15 + $0x210] sm:$0xff]  ;;  %v541_v15 = vld [vmem:[%s2829_s15 + $0x220] sm:$0xff]  ;;  %v542_v6 = vld [vmem:[%s2829_s15 + $0x228] sm:$0xff] }
  0xe8   : >> { %2023 = vmatprep.subr.bf16.mxu1 %v2022_v23  ;;  %v520_v23 = vld [vmem:[%s2829_s15 + $0x178] sm:$0xff]  ;;  %v2041_v9 = vpack.c.bf16 %v542_v6, %v541_v15  ;;  %v545_v21 = vld [vmem:[%s2829_s15 + $0x240] sm:$0xff]  ;;  %v3254_v25 = vld [vmem:[#allocation13_spill] sm:$0xff] }
  0xe9   : >> { %1993 = vmatpush3.bf16.msra.mxu0 %v1992_v12  ;;  %v2032_v3 = vpack.c.bf16 %v520_v23, %v519_v61  ;;  %v2035_v12 = vpack.c.bf16 %v538_v48, %v537_v5  ;;  %v544_v16 = vld [vmem:[%s2829_s15 + $0x238] sm:$0xff]  ;;  %v550_v61 = vld [vmem:[%s2829_s15 + $0x268] sm:$0xff]  ;;  %v2338_v48 = vmov 0.0   ;;  %v3260_v15 = vld [vmem:[#allocation17_spill] sm:$0xff] }
  0xea   : >> { %1995 = vmatprep.subr.bf16.mxu0 %v1994_v11  ;;  %v2038_v11 = vpack.c.bf16 %v540_v19, %v539_v17  ;;  %v548_v4 = vld [vmem:[%s2829_s15 + $0x258] sm:$0xff]  ;;  %v3255_v24 = vld [vmem:[#allocation12_spill] sm:$0xff]  ;;  %v3258_v19 = vld [vmem:[#allocation15_spill] sm:$0xff] }
  0xeb   : >> { %2025 = vmatpush3.bf16.msra.mxu1 %v2024_v13  ;;  %v2337_v13 = vmov 0.0|0.0   ;;  %v3257_v17 = vld [vmem:[#allocation16_spill] sm:$0xff]  ;;  %v3261_v6 = vld [vmem:[#allocation23_spill] sm:$0xff] }
  0xec   : >> { %2027 = vmatprep.subr.bf16.mxu1 %v2026_v8  ;;  %v543_v8 = vld [vmem:[%s2829_s15 + $0x230] sm:$0xff] }
  0xed   : >> { %1997 = vmatpush3.bf16.msra.mxu0 %v1996_v7  ;;  %v2044_v10 = vpack.c.bf16 %v544_v16, %v543_v8  ;;  %v546_v7 = vld [vmem:[%s2829_s15 + $0x248] sm:$0xff] }
  0xee   : >> { %1999 = vmatprep.subr.bf16.mxu0 %v1998_v14  ;;  %v547_v14 = vld [vmem:[%s2829_s15 + $0x250] sm:$0xff]  ;;  %v3263_v8 = vld [vmem:[#allocation32_spill] sm:$0xff] }
  0xef   : >> { %2029 = vmatpush3.bf16.msra.mxu1 %v2028_v18  ;;  %v2047_v18 = vpack.c.bf16 %v546_v7, %v545_v21  ;;  %v2050_v54 = vpack.c.bf16 %v548_v4, %v547_v14 }
  0xf0   : >> { %2031 = vmatprep.subr.bf16.mxu1 %v2030_v55  ;;  %v549_v55 = vld [vmem:[%s2829_s15 + $0x260] sm:$0xff] }
  0xf1   : >> { %2001 = vmatpush3.bf16.msra.mxu0 %v2000_v62  ;;  %v2053_v23 = vpack.c.bf16 %v550_v61, %v549_v55  ;;  %v551_v62 = vld [vmem:[%s2829_s15 + $0x270] sm:$0xff] }
  0xf2   : >> { %2034 = vmatprep.subr.bf16.mxu0 %v2337_v13 }
  0xf3   : >> { %2033 = vmatpush3.bf16.msra.mxu1 %v2032_v3  ;;  %v552_v3 = vld [vmem:[%s2829_s15 + $0x278] sm:$0xff] }
  0xf4   : >> { %684 = vmatmul.mubr.f32.vlgmr.msra.gmra.mrb[0].mxu0 %v3249_v20  ;;  %v2056_v5 = vpack.c.bf16 %v552_v3, %v551_v62 }
  0xf5   : >> { %2036 = vmatpush1.bf16.msra.mxu0 %v2035_v12  ;;  %688 = vmatprep.mubr.f32.mxu0 %v2489_v27  ;;  %v553_v12 = vld [vmem:[%s2829_s15 + $0x280] sm:$0xff] }
  0xf6   : >> { %789 = vmatmul.mubr.f32.vlgmr.msra.gmra.mrb[0].mxu1 %v3250_v22  ;;  %2037 = vmatprep.subr.bf16.mxu0 %v2337_v13 }
  0xf7   : >> { %793 = vmatprep.mubr.f32.mxu1 %v2499_v29 }
  0xf8   : >> { %689 = vmatmul.mubr.f32.gmra.mrb[2].mxu0 %v2484_v26 }
  0xf9   : >> { %2039 = vmatpush1.bf16.msra.mxu0 %v2038_v11  ;;  %693 = vmatprep.mubr.f32.mxu0 %v2519_v33  ;;  %v3259_v11 = vld [vmem:[#allocation18_spill] sm:$0xff] }
  0xfa   : >> { %794 = vmatmul.mubr.f32.gmra.mrb[2].mxu1 %v2494_v28  ;;  %2040 = vmatprep.subr.bf16.mxu0 %v2337_v13 }
  0xfb   : >> { %798 = vmatprep.mubr.f32.mxu1 %v2529_v35 }
  0xfc   : >> { %694 = vmatmul.mubr.f32.gmra.mrb[4].mxu0 %v2514_v32 }
  0xfd   : >> { %2042 = vmatpush1.bf16.msra.mxu0 %v2041_v9  ;;  %698 = vmatprep.mubr.f32.mxu0 %v2549_v39  ;;  %v3262_v9 = vld [vmem:[#allocation22_spill] sm:$0xff] }
  0xfe   : >> { %799 = vmatmul.mubr.f32.gmra.mrb[4].mxu1 %v2524_v34  ;;  %2043 = vmatprep.subr.bf16.mxu0 %v2337_v13 }
  0xff   : >> { %803 = vmatprep.mubr.f32.mxu1 %v2559_v41 }
 0x100   : >> { %699 = vmatmul.mubr.f32.gmra.mrb[6].mxu0 %v2544_v38 }
 0x101   : >> { %2045 = vmatpush1.bf16.msra.mxu0 %v2044_v10  ;;  %703 = vmatprep.mubr.f32.mxu0 %v2579_v45 }
 0x102   : >> { %804 = vmatmul.mubr.f32.gmra.mrb[6].mxu1 %v2554_v40  ;;  %2046 = vmatprep.subr.bf16.mxu0 %v2337_v13 }
 0x103   : >> { %808 = vmatprep.mubr.f32.mxu1 %v2589_v47 }
 0x104   : >> { %704 = vmatmul.mubr.f32.gmra.mrb[8].mxu0 %v2574_v44 }
 0x105   : >> { %2048 = vmatpush1.bf16.msra.mxu0 %v2047_v18  ;;  %708 = vmatprep.mubr.f32.mxu0 %v2609_v51 }
 0x106   : >> { %809 = vmatmul.mubr.f32.gmra.mrb[8].mxu1 %v2584_v46  ;;  %2049 = vmatprep.subr.bf16.mxu0 %v2337_v13 }
 0x107   : >> { %813 = vmatprep.mubr.f32.mxu1 %v2619_v53 }
 0x108   : >> { %709 = vmatmul.mubr.f32.gmra.mrb[10].mxu0 %v2604_v50 }
 0x109   : >> { %2051 = vmatpush1.bf16.msra.mxu0 %v2050_v54  ;;  %713 = vmatprep.mubr.f32.mxu0 %v2639_v57 }
 0x10a   : >> { %814 = vmatmul.mubr.f32.gmra.mrb[10].mxu1 %v2614_v52  ;;  %2052 = vmatprep.subr.bf16.mxu0 %v2337_v13 }
 0x10b   : >> { %818 = vmatprep.mubr.f32.mxu1 %v2649_v60 }
 0x10c   : >> { %714 = vmatmul.mubr.f32.gmra.mrb[12].mxu0 %v2634_v56 }
 0x10d   : >> { %2054 = vmatpush1.bf16.msra.mxu0 %v2053_v23  ;;  %718 = vmatprep.mubr.f32.mxu0 %v3251_v0 }
 0x10e   : >> { %819 = vmatmul.mubr.f32.gmra.mrb[12].mxu1 %v2644_v58  ;;  %2055 = vmatprep.subr.bf16.mxu0 %v2337_v13  ;;  %v3256_v13 = vld [vmem:[#allocation14_spill] sm:$0xff] }
 0x10f   : >> { %823 = vmatprep.mubr.f32.mxu1 %v3252_v2 }
 0x110   : >> { %719 = vmatmul.mubr.f32.gmra.mrb[14].mxu0 %v2664_v63 }
 0x111   : >> { %2057 = vmatpush1.bf16.msra.mxu0 %v2056_v5  ;;  %1684 = vmatprep.mubr.msk.f32.mxu0 %vm594_vm4, %v3254_v25 }
 0x112   : >> { %824 = vmatmul.mubr.f32.gmra.mrb[14].mxu1 %v3253_v1  ;;  %861 = vmatprep.subr.mxu0 %v2338_v48 }
 0x113   : >> { %1953 = vmatprep.mubr.msk.f32.mxu1 %vm962_vm5, %v3263_v8 }
 0x115   : >> { %862 = vmatpush1.msra.mxu0 %v553_v12 }
 0x116   : >> { %894 = vmatmul.mubr.f32.vlgmr.msra.gmra.mrb[16].mxu0 %v3255_v24 }
 0x117   : >> { %1685 = vmatprep.mubr.msk.f32.mxu0 %vm594_vm4, %v2509_v31 }
 0x11a   : >> { %899 = vmatmul.mubr.f32.gmra.mrb[18].mxu0 %v2504_v30 }
 0x11b   : >> { %1686 = vmatprep.mubr.msk.f32.mxu0 %vm594_vm4, %v2539_v37 }
 0x11e   : >> { %904 = vmatmul.mubr.f32.gmra.mrb[20].mxu0 %v2534_v36 }
 0x11f   : >> { %1687 = vmatprep.mubr.msk.f32.mxu0 %vm594_vm4, %v2569_v43 }
 0x122   : >> { %909 = vmatmul.mubr.f32.gmra.mrb[22].mxu0 %v2564_v42 }
 0x123   : >> { %1688 = vmatprep.mubr.msk.f32.mxu0 %vm594_vm4, %v2599_v49 }
 0x126   : >> { %914 = vmatmul.mubr.f32.gmra.mrb[24].mxu0 %v3256_v13 }
 0x127   : >> { %1689 = vmatprep.mubr.msk.f32.mxu0 %vm594_vm4, %v3257_v17 }
 0x12a   : >> { %919 = vmatmul.mubr.f32.gmra.mrb[26].mxu0 %v3258_v19 }
 0x12b   : >> { %1690 = vmatprep.mubr.msk.f32.mxu0 %vm594_vm4, %v3259_v11 }
 0x12e   : >> { %924 = vmatmul.mubr.f32.gmra.mrb[28].mxu0 %v3260_v15 }
 0x12f   : >> { %1691 = vmatprep.mubr.msk.f32.mxu0 %vm594_vm4, %v3261_v6 }
 0x132   : >> { %929 = vmatmul.mubr.f32.gmra.mrb[30].mxu0 %v3262_v9 }
 0x14d   : >> { %v557_v16 = vpop.permute.xlu0 %556  ;;  %v567_v48 = vpop.permute.xlu1 %566 }
 0x151   : >> { %v562_v61 = vpop.permute.xlu0 %561 }
 0x1c7   : >> { %v1735_v10 = vpop.f32.mrb[0].mxu0 }
 0x1c8   : >> { %v1736_v21 = vpop.f32.mrb[1].mxu0 }
 0x1c9   : >> { %v1791_v7 = vpop.f32.mrb[0].mxu1  ;;  %v1737_v18 = vadd.f32 %v1736_v21, %v1735_v10 }
 0x1ca   : >> { %v1792_v14 = vpop.f32.mrb[1].mxu1 }
 0x1cb   : >> { %v1793_v4 = vadd.f32 %v1792_v14, %v1791_v7  ;;  %v686_v54 = vadd.f32 %v1737_v18, %v557_v16  ;;  %v1738_v55 = vpop.f32.mrb[2].mxu0  ;;  %v572_v16 = vpop.permute.xlu1 %571 }
 0x1cc   : >> { %v1739_v23 = vpop.f32.mrb[3].mxu0 }
 0x1cd   : >> { %v1794_v62 = vpop.f32.mrb[2].mxu1  ;;  %v1740_v3 = vadd.f32 %v1739_v23, %v1738_v55  ;;  %v791_v12 = vadd.f32 %v1793_v4, %v686_v54  ;;  %v577_v54 = vpop.permute.xlu0 %576 }
 0x1ce   : >> { %v1795_v5 = vpop.f32.mrb[3].mxu1 }
 0x1cf   : >> { %v1796_v13 = vadd.f32 %v1795_v5, %v1794_v62  ;;  %v691_v17 = vadd.f32 %v1740_v3, %v562_v61  ;;  %v1741_v19 = vpop.f32.mrb[4].mxu0 }
 0x1d0   : >> { %v1742_v11 = vpop.f32.mrb[5].mxu0 }
 0x1d1   : >> { %v1797_v15 = vpop.f32.mrb[4].mxu1  ;;  %v1743_v6 = vadd.f32 %v1742_v11, %v1741_v19  ;;  %v796_v8 = vadd.f32 %v1796_v13, %v691_v17 }
 0x1d2   : >> { %v1798_v9 = vpop.f32.mrb[5].mxu1 }
 0x1d3   : >> { %v1799_v10 = vadd.f32 %v1798_v9, %v1797_v15  ;;  %v696_v21 = vadd.f32 %v1743_v6, %v567_v48  ;;  %v1744_v7 = vpop.f32.mrb[6].mxu0  ;;  %v582_v48 = vpop.permute.xlu1 %581 }
 0x1d4   : >> { %v1745_v18 = vpop.f32.mrb[7].mxu0 }
 0x1d5   : >> { %v1800_v14 = vpop.f32.mrb[6].mxu1  ;;  %v1746_v0 = vadd.f32 %v1745_v18, %v1744_v7  ;;  %v801_v55 = vadd.f32 %v1799_v10, %v696_v21  ;;  %v587_v10 = vpop.permute.xlu0 %586 }
 0x1d6   : >> { %v1801_v1 = vpop.f32.mrb[7].mxu1 }
 0x1d7   : >> { %v1802_v23 = vadd.f32 %v1801_v1, %v1800_v14  ;;  %v701_v2 = vadd.f32 %v1746_v0, %v572_v16  ;;  %v1747_v4 = vpop.f32.mrb[8].mxu0 }
 0x1d8   : >> { %v1748_v61 = vpop.f32.mrb[9].mxu0 }
 0x1d9   : >> { %v1803_v62 = vpop.f32.mrb[8].mxu1  ;;  %v1749_v3 = vadd.f32 %v1748_v61, %v1747_v4  ;;  %v806_v19 = vadd.f32 %v1802_v23, %v701_v2 }
 0x1da   : >> { %v1804_v5 = vpop.f32.mrb[9].mxu1 }
 0x1db   : >> { %v1805_v11 = vadd.f32 %v1804_v5, %v1803_v62  ;;  %v706_v13 = vadd.f32 %v1749_v3, %v577_v54  ;;  %v1750_v17 = vpop.f32.mrb[10].mxu0  ;;  %v592_v54 = vpop.permute.xlu1 %591 }
 0x1dc   : >> { %v1751_v15 = vpop.f32.mrb[11].mxu0 }
 0x1dd   : >> { %v1806_v6 = vpop.f32.mrb[10].mxu1  ;;  %v1752_v9 = vadd.f32 %v1751_v15, %v1750_v17  ;;  %v811_v7 = vadd.f32 %v1805_v11, %v706_v13 }
 0x1de   : >> { %v1807_v20 = vpop.f32.mrb[11].mxu1 }
 0x1df   : >> { %v1808_v18 = vadd.f32 %v1807_v20, %v1806_v6  ;;  %v711_v1 = vadd.f32 %v1752_v9, %v582_v48  ;;  %v1753_v0 = vpop.f32.mrb[12].mxu0 }
 0x1e0   : >> { %v1754_v21 = vpop.f32.mrb[13].mxu0 }
 0x1e1   : >> { %v1809_v16 = vpop.f32.mrb[12].mxu1  ;;  %v1755_v14 = vadd.f32 %v1754_v21, %v1753_v0  ;;  %v816_v4 = vadd.f32 %v1808_v18, %v711_v1 }
 0x1e2   : >> { %v1810_v22 = vpop.f32.mrb[13].mxu1 }
 0x1e3   : >> { %v1811_v61 = vadd.f32 %v1810_v22, %v1809_v16  ;;  %v716_v2 = vadd.f32 %v1755_v14, %v587_v10  ;;  %v1756_v23 = vpop.f32.mrb[14].mxu0 }
 0x1e4   : >> { %v1757_v62 = vpop.f32.mrb[15].mxu0 }
 0x1e5   : >> { %v1812_v3 = vpop.f32.mrb[14].mxu1  ;;  %v1758_v5 = vadd.f32 %v1757_v62, %v1756_v23  ;;  %v821_v17 = vadd.f32 %v1811_v61, %v716_v2 }
 0x1e6   : >> { %v1813_v24 = vpop.f32.mrb[15].mxu1 }
 0x1e7   : >> { %v1814_v15 = vadd.f32 %v1813_v24, %v1812_v3  ;;  %v721_v11 = vadd.f32 %v1758_v5, %v592_v54 }
 0x1e9   : >> { %v895_v20 = vpop.f32.mrb[16].mxu0  ;;  %v826_v13 = vadd.f32 %v1814_v15, %v721_v11 }
 0x1ea   : >> { %v896_v48 = vadd.f32 %v895_v20, %v791_v12  ;;  %v897_v6 = vpop.f32.mrb[17].mxu0 }
 0x1ec   : >> { %v934_v21 = vmax.f32 %v896_v48, 0.0 }
 0x1ed   : >> { %v900_v9 = vpop.f32.mrb[18].mxu0 }
 0x1ee   : >> { %v901_v25 = vadd.f32 %v900_v9, %v796_v8  ;;  %v902_v0 = vpop.f32.mrb[19].mxu0 }
 0x1f0   : >> { %v935_v18 = vmax.f32 %v901_v25, 0.0 }
 0x1f1   : >> { %v905_v22 = vpop.f32.mrb[20].mxu0 }
 0x1f2   : >> { %v2058_v10 = vpack.c.bf16 %v935_v18, %v934_v21  ;;  %v906_v1 = vadd.f32 %v905_v22, %v801_v55  ;;  %v907_v16 = vpop.f32.mrb[21].mxu0  ;;  %v3265_v22 = vld [vmem:[#allocation34_spill] sm:$0xff] }
 0x1f4   : >> { %2059 = vmatprep.subr.bf16.mxu1 %v2058_v10  ;;  %v936_v24 = vmax.f32 %v906_v1, 0.0  ;;  %v945_v1 = vpop.permute.xlu0 %944 }
 0x1f5   : >> { %v910_v14 = vpop.f32.mrb[22].mxu0  ;;  %2061 = vmatpush3.bf16.msra.mxu1 %v2058_v10  ;;  %v950_v10 = vpop.permute.xlu1 %949 }
 0x1f6   : >> { %v911_v23 = vadd.f32 %v910_v14, %v806_v19  ;;  %v912_v61 = vpop.f32.mrb[23].mxu0 }
 0x1f8   : >> { %v937_v2 = vmax.f32 %v911_v23, 0.0 }
 0x1f9   : >> { %v915_v54 = vpop.f32.mrb[24].mxu0 }
 0x1fa   : >> { %v2062_v62 = vpack.c.bf16 %v937_v2, %v936_v24  ;;  %v916_v12 = vadd.f32 %v915_v54, %v811_v7  ;;  %v917_v3 = vpop.f32.mrb[25].mxu0 }
 0x1fc   : >> { %2063 = vmatprep.subr.bf16.mxu1 %v2062_v62  ;;  %v938_v15 = vmax.f32 %v916_v12, 0.0 }
 0x1fd   : >> { %v920_v8 = vpop.f32.mrb[26].mxu0  ;;  %2065 = vmatpush3.bf16.msra.mxu1 %v2062_v62  ;;  %v960_v62 = vpop.permute.xlu1 %959 }
 0x1fe   : >> { %v921_v5 = vadd.f32 %v920_v8, %v816_v4  ;;  %v922_v25 = vpop.f32.mrb[27].mxu0  ;;  %v3264_v4 = vld [vmem:[#allocation33_spill] sm:$0xff]  ;;  %v955_v8 = vpop.permute.xlu0 %954 }
 0x200   : >> { %v939_v11 = vmax.f32 %v921_v5, 0.0 }
 0x201   : >> { %v925_v55 = vpop.f32.mrb[28].mxu0 }
 0x202   : >> { %v2066_v20 = vpack.c.bf16 %v939_v11, %v938_v15  ;;  %v926_v48 = vadd.f32 %v925_v55, %v821_v17  ;;  %v927_v19 = vpop.f32.mrb[29].mxu0  ;;  %v3266_v17 = vld [vmem:[#allocation35_spill] sm:$0xff] }
 0x204   : >> { %2067 = vmatprep.subr.bf16.mxu1 %v2066_v20  ;;  %v940_v7 = vmax.f32 %v926_v48, 0.0 }
 0x205   : >> { %v930_v6 = vpop.f32.mrb[30].mxu0  ;;  %2069 = vmatpush3.bf16.msra.mxu1 %v2066_v20 }
 0x206   : >> { %v931_v9 = vadd.f32 %v930_v6, %v826_v13  ;;  %v932_v0 = vpop.f32.mrb[31].mxu0  ;;  %v1071_v13 = vstv %s1697_s19 }
 0x207   : >> { %vm1072_vm6 = vcmp.eq.s32.totalorder %v1071_v13, 1 }
 0x208   : >> { %v941_v21 = vmax.f32 %v931_v9, 0.0  ;;  %vm2989_vm7 = vmand %vm1072_vm6, %vm2796_vm2 }
 0x20a   : >> { %v2070_v18 = vpack.c.bf16 %v941_v21, %v940_v7 }
 0x20c   : >> { %2071 = vmatprep.subr.bf16.mxu1 %v2070_v18 }
 0x20d   : >> { %2073 = vmatpush3.bf16.msra.mxu1 %v2070_v18 }
 0x210   : >> { %1954 = vmatmul.mubr.msk.f32.vlgmr.msra.gmra.mrb[16].mxu1 %vm962_vm5, %v3264_v4 }
 0x211   : >> { %1956 = vmatprep.mubr.msk.f32.mxu1 %vm962_vm5, %v3265_v22 }
 0x214   : >> { %1957 = vmatmul.mubr.msk.f32.gmra.mrb[18].mxu1 %vm962_vm5, %v3266_v17 }
 0x2e3   : >> { %v1955_v16 = vpop.f32.mrb[16].mxu1 }
 0x2e4   : >> { %v1047_v14 = vadd.f32 %v1955_v16, %v950_v10  ;;  %v1041_v23 = vpop.f32.mrb[17].mxu1 }
 0x2e5   : >> { %v1042_v2 = vadd.f32 %v1041_v23, %v945_v1 }
 0x2e6   : >> { %v1061_v54 = vmax.f32 %v1047_v14, 0.0 }
 0x2e7   : >> { %v1060_v12 = vmax.f32 %v1042_v2, 0.0  ;;  %v1958_v3 = vpop.f32.mrb[18].mxu1 }
 0x2e8   : >> { %v1075_v5 = vsel %vm2989_vm7, %v1061_v54, 0.0  ;;  %v1057_v25 = vadd.f32 %v1958_v3, %v960_v62  ;;  %v1051_v15 = vpop.f32.mrb[19].mxu1 }
 0x2e9   : >> { %1134 = vst.msk [vmem:[%s2995_s21 + $0x8] sm:$0xff] %vm1132_vm8, %v1075_v5  ;;  %v1074_v11 = vsel %vm2989_vm7, %v1060_v12, 0.0  ;;  %v1052_v55 = vadd.f32 %v1051_v15, %v955_v8  ;;  %1084 = vrot.lane.b32.xlu1 %v1075_v5, %s2339_s22 }
 0x2ea   : >> { %1133 = vst.msk [vmem:[%s2995_s21] sm:$0xff] %vm1132_vm8, %v1074_v11  ;;  %v1063_v20 = vmax.f32 %v1057_v25, 0.0  ;;  %1082 = vrot.lane.b32.xlu0 %v1074_v11, %s2339_s22 }
 0x2eb   : >> { %v1062_v48 = vmax.f32 %v1052_v55, 0.0 }
 0x2ec   : >> { %v1077_v19 = vsel %vm2989_vm7, %v1063_v20, 0.0 }
 0x2ed   : >> { %1136 = vst.msk [vmem:[%s2995_s21 + $0x18] sm:$0xff] %vm1132_vm8, %v1077_v19  ;;  %v1076_v6 = vsel %vm2989_vm7, %v1062_v48, 0.0  ;;  %1096 = vrot.lane.b32.xlu1 %v1075_v5, %s2340_s23 }
 0x2ee   : >> { %1135 = vst.msk [vmem:[%s2995_s21 + $0x10] sm:$0xff] %vm1132_vm8, %v1076_v6  ;;  %1094 = vrot.lane.b32.xlu0 %v1074_v11, %s2340_s23 }
 0x2f1   : >> { %1108 = vrot.lane.b32.xlu1 %v1075_v5, %s2341_s24 }
 0x2f2   : >> { %1106 = vrot.lane.b32.xlu0 %v1074_v11, %s2341_s24 }
 0x2f5   : >> { %1120 = vrot.lane.b32.xlu1 %v1075_v5, %s2342_s25 }
 0x2f6   : >> { %1118 = vrot.lane.b32.xlu0 %v1074_v11, %s2342_s25 }
 0x2f9   : >> { %1088 = vrot.lane.b32.xlu1 %v1077_v19, %s2339_s22 }
 0x2fa   : >> { %1086 = vrot.lane.b32.xlu0 %v1076_v6, %s2339_s22 }
 0x2fd   : >> { %1100 = vrot.lane.b32.xlu1 %v1077_v19, %s2340_s23 }
 0x2fe   : >> { %1098 = vrot.lane.b32.xlu0 %v1076_v6, %s2340_s23 }
 0x301   : >> { %1112 = vrot.lane.b32.xlu1 %v1077_v19, %s2341_s24 }
 0x302   : >> { %1110 = vrot.lane.b32.xlu0 %v1076_v6, %s2341_s24 }
 0x305   : >> { %1124 = vrot.lane.b32.xlu1 %v1077_v19, %s2342_s25 }
 0x306   : >> { %1122 = vrot.lane.b32.xlu0 %v1076_v6, %s2342_s25 }
 0x35b   : >> { %v1085_v9 = vpop.permute.xlu1 %1084 }
 0x35c   : >> { %1138 = vst.msk [vmem:[%s2995_s21 + $0x28] sm:$0xff] %vm1132_vm8, %v1085_v9  ;;  %v1083_v0 = vpop.permute.xlu0 %1082 }
 0x35d   : >> { %1137 = vst.msk [vmem:[%s2995_s21 + $0x20] sm:$0xff] %vm1132_vm8, %v1083_v0 }
 0x35f   : >> { %v1097_v7 = vpop.permute.xlu1 %1096 }
 0x360   : >> { %1142 = vst.msk [vmem:[%s2995_s21 + $0x48] sm:$0xff] %vm1132_vm8, %v1097_v7  ;;  %v1095_v21 = vpop.permute.xlu0 %1094 }
 0x361   : >> { %1141 = vst.msk [vmem:[%s2995_s21 + $0x40] sm:$0xff] %vm1132_vm8, %v1095_v21 }
 0x363   : >> { %v1109_v18 = vpop.permute.xlu1 %1108 }
 0x364   : >> { %1146 = vst.msk [vmem:[%s2995_s21 + $0x68] sm:$0xff] %vm1132_vm8, %v1109_v18  ;;  %v1107_v4 = vpop.permute.xlu0 %1106 }
 0x365   : >> { %1145 = vst.msk [vmem:[%s2995_s21 + $0x60] sm:$0xff] %vm1132_vm8, %v1107_v4 }
 0x367   : >> { %v1121_v22 = vpop.permute.xlu1 %1120 }
 0x368   : >> { %1150 = vst.msk [vmem:[%s2995_s21 + $0x88] sm:$0xff] %vm1132_vm8, %v1121_v22  ;;  %v1119_v17 = vpop.permute.xlu0 %1118 }
 0x369   : >> { %1149 = vst.msk [vmem:[%s2995_s21 + $0x80] sm:$0xff] %vm1132_vm8, %v1119_v17 }
 0x36b   : >> { %v1089_v13 = vpop.permute.xlu1 %1088 }
 0x36c   : >> { %1140 = vst.msk [vmem:[%s2995_s21 + $0x38] sm:$0xff] %vm1132_vm8, %v1089_v13  ;;  %v1087_v10 = vpop.permute.xlu0 %1086 }
 0x36d   : >> { %1139 = vst.msk [vmem:[%s2995_s21 + $0x30] sm:$0xff] %vm1132_vm8, %v1087_v10 }
 0x36f   : >> { %v1101_v1 = vpop.permute.xlu1 %1100 }
 0x370   : >> { %1144 = vst.msk [vmem:[%s2995_s21 + $0x58] sm:$0xff] %vm1132_vm8, %v1101_v1  ;;  %v1099_v16 = vpop.permute.xlu0 %1098 }
 0x371   : >> { %1143 = vst.msk [vmem:[%s2995_s21 + $0x50] sm:$0xff] %vm1132_vm8, %v1099_v16 }
 0x373   : >> { %v1113_v14 = vpop.permute.xlu1 %1112  ;;  %469 = sbr.rel (!%p467_p11) target bundleno = 203 (0xcb), region = 153 }
 0x374   : >> { %1148 = vst.msk [vmem:[%s2995_s21 + $0x78] sm:$0xff] %vm1132_vm8, %v1113_v14  ;;  %v1111_v23 = vpop.permute.xlu0 %1110 }
 0x375   : >> { %1147 = vst.msk [vmem:[%s2995_s21 + $0x70] sm:$0xff] %vm1132_vm8, %v1111_v23 }
 0x377   : >> { %v1125_v61 = vpop.permute.xlu1 %1124 }
 0x378   : >> { %1152 = vst.msk [vmem:[%s2995_s21 + $0x98] sm:$0xff] %vm1132_vm8, %v1125_v61  ;;  %v1123_v24 = vpop.permute.xlu0 %1122 }
 0x379   : >> { %1151 = vst.msk [vmem:[%s2995_s21 + $0x90] sm:$0xff] %vm1132_vm8, %v1123_v24 }
 0x37a LB: >> { %v3270_v2 = vld [vmem:[#allocation39_spill] sm:$0xff]  ;;  %v3271_v62 = vld [vmem:[#allocation40_spill] sm:$0xff]  ;;  %s1159_s10 = smul.u32 160, %s2326_s9  ;;  %v2343_v3 = vmov 0   ;;  %vm2345_vm9 = vmmov 0   ;;  %vm1276_vm10 = vcmask 261120   ;;  %s2326_s9 = sphi %s3046_s9, %s1158_s9  }
 0x37b   : >> { %v1270_v54 = vcombine.high %v3270_v2, %v3270_v2  ;;  %v1271_v12 = vcombine.high %v3271_v62, %v3271_v62  ;;  %2261 = vset.pattern.permute.xlu0 %v2343_v3  ;;  %v3272_v8 = vld [vmem:[#allocation43_spill] sm:$0xff]  ;;  %s1699_s11 = sshll.u32 %s2326_s9, 2  ;;  %vm1561_vm11 = vcmask 124928   ;;  %s1158_s9 = sadd.s32 1, %s2326_s9  }
 0x37c   : >> { %1263 = vperm.xlu0 %2261, %v3272_v8   ;;  %s3057_s8 = scalar_lea.vmem [#allocation4], %s1159_s10  ;;  %s1560_s12 = scalar_lea.vmem %s2424_s16, %s1699_s11 }
 0x37d   : >> { %1343 = vmatprep.mubr.f32.mxu0 %v1270_v54  ;;  %1413 = vmatprep.mubr.f32.mxu1 %v1271_v12  ;;  %p1155_p12 = scmp.ge.s32.totalorder %s1158_s9, 8  }
 0x380   : >> { %v1177_v26 = vld [vmem:[%s3057_s8 + $0x80] sm:$0xff]  ;;  %v1178_v27 = vld [vmem:[%s3057_s8 + $0x88] sm:$0xff]  ;;  %v1179_v37 = vld [vmem:[%s3057_s8 + $0x90] sm:$0xff] }
 0x381   : >> { %v1161_v28 = vld [vmem:[%s3057_s8] sm:$0xff]  ;;  %v2074_v29 = vpack.c.bf16 %v1178_v27, %v1177_v26  ;;  %v1162_v30 = vld [vmem:[%s3057_s8 + $0x8] sm:$0xff]  ;;  %v1180_v39 = vld [vmem:[%s3057_s8 + $0x98] sm:$0xff] }
 0x382   : >> { %v1209_v31 = vld [vmem:[%s3057_s8 + $0x180] sm:$0xff]  ;;  %v1210_v32 = vld [vmem:[%s3057_s8 + $0x188] sm:$0xff]  ;;  %v2076_v33 = vpack.c.bf16 %v1162_v30, %v1161_v28  ;;  %v1163_v40 = vld [vmem:[%s3057_s8 + $0x10] sm:$0xff]  ;;  %v2078_v42 = vpack.c.bf16 %v1180_v39, %v1179_v37 }
 0x383   : >> { %v2106_v34 = vpack.c.bf16 %v1210_v32, %v1209_v31  ;;  %v1193_v35 = vld [vmem:[%s3057_s8 + $0x100] sm:$0xff]  ;;  %v1194_v36 = vld [vmem:[%s3057_s8 + $0x108] sm:$0xff]  ;;  %2075 = vmatprep.subr.bf16.mxu0 %v2074_v29  ;;  %v1164_v41 = vld [vmem:[%s3057_s8 + $0x18] sm:$0xff] }
 0x384   : >> { %v2108_v38 = vpack.c.bf16 %v1194_v36, %v1193_v35  ;;  %2077 = vmatpush3.bf16.msra.mxu0 %v2076_v33  ;;  %v2080_v43 = vpack.c.bf16 %v1164_v41, %v1163_v40  ;;  %v1211_v44 = vld [vmem:[%s3057_s8 + $0x190] sm:$0xff]  ;;  %v1212_v45 = vld [vmem:[%s3057_s8 + $0x198] sm:$0xff]  ;;  %v1181_v50 = vld [vmem:[%s3057_s8 + $0xa0] sm:$0xff] }
 0x385   : >> { %2107 = vmatprep.subr.bf16.mxu1 %v2106_v34  ;;  %v1195_v46 = vld [vmem:[%s3057_s8 + $0x110] sm:$0xff]  ;;  %v2110_v47 = vpack.c.bf16 %v1212_v45, %v1211_v44  ;;  %v1196_v49 = vld [vmem:[%s3057_s8 + $0x118] sm:$0xff]  ;;  %v1182_v51 = vld [vmem:[%s3057_s8 + $0xa8] sm:$0xff]  ;;  %2079 = vmatprep.subr.bf16.mxu0 %v2078_v42 }
 0x386   : >> { %2109 = vmatpush3.bf16.msra.mxu1 %v2108_v38  ;;  %v2112_v52 = vpack.c.bf16 %v1196_v49, %v1195_v46  ;;  %v2082_v53 = vpack.c.bf16 %v1182_v51, %v1181_v50  ;;  %v1165_v56 = vld [vmem:[%s3057_s8 + $0x20] sm:$0xff]  ;;  %v1166_v57 = vld [vmem:[%s3057_s8 + $0x28] sm:$0xff]  ;;  %v1183_v15 = vld [vmem:[%s3057_s8 + $0xb0] sm:$0xff] }
 0x387   : >> { %v1213_v58 = vld [vmem:[%s3057_s8 + $0x1a0] sm:$0xff]  ;;  %2111 = vmatprep.subr.bf16.mxu1 %v2110_v47  ;;  %v1214_v60 = vld [vmem:[%s3057_s8 + $0x1a8] sm:$0xff]  ;;  %v2084_v5 = vpack.c.bf16 %v1166_v57, %v1165_v56  ;;  %v1184_v11 = vld [vmem:[%s3057_s8 + $0xb8] sm:$0xff] }
 0x388   : >> { %v1197_v63 = vld [vmem:[%s3057_s8 + $0x120] sm:$0xff]  ;;  %v1198_v59 = vld [vmem:[%s3057_s8 + $0x128] sm:$0xff]  ;;  %2081 = vmatpush3.bf16.msra.mxu0 %v2080_v43  ;;  %v2114_v25 = vpack.c.bf16 %v1214_v60, %v1213_v58  ;;  %v1167_v55 = vld [vmem:[%s3057_s8 + $0x30] sm:$0xff]  ;;  %v2086_v48 = vpack.c.bf16 %v1184_v11, %v1183_v15 }
 0x389   : >> { %2083 = vmatprep.subr.bf16.mxu0 %v2082_v53  ;;  %v2116_v20 = vpack.c.bf16 %v1198_v59, %v1197_v63  ;;  %v1168_v19 = vld [vmem:[%s3057_s8 + $0x38] sm:$0xff]  ;;  %v1215_v6 = vld [vmem:[%s3057_s8 + $0x1b0] sm:$0xff]  ;;  %v1185_v18 = vld [vmem:[%s3057_s8 + $0xc0] sm:$0xff] }
 0x38a   : >> { %2113 = vmatpush3.bf16.msra.mxu1 %v2112_v52  ;;  %v1216_v9 = vld [vmem:[%s3057_s8 + $0x1b8] sm:$0xff]  ;;  %v1199_v7 = vld [vmem:[%s3057_s8 + $0x130] sm:$0xff]  ;;  %v1186_v4 = vld [vmem:[%s3057_s8 + $0xc8] sm:$0xff]  ;;  %v2088_v22 = vpack.c.bf16 %v1168_v19, %v1167_v55 }
 0x38b   : >> { %2115 = vmatprep.subr.bf16.mxu1 %v2114_v25  ;;  %v2118_v0 = vpack.c.bf16 %v1216_v9, %v1215_v6  ;;  %v1200_v21 = vld [vmem:[%s3057_s8 + $0x138] sm:$0xff]  ;;  %v1217_v17 = vld [vmem:[%s3057_s8 + $0x1c0] sm:$0xff]  ;;  %v1218_v13 = vld [vmem:[%s3057_s8 + $0x1c8] sm:$0xff]  ;;  %v2090_v1 = vpack.c.bf16 %v1186_v4, %v1185_v18 }
 0x38c   : >> { %2085 = vmatpush3.bf16.msra.mxu0 %v2084_v5  ;;  %v2120_v10 = vpack.c.bf16 %v1200_v21, %v1199_v7  ;;  %v1169_v16 = vld [vmem:[%s3057_s8 + $0x40] sm:$0xff]  ;;  %v1170_v14 = vld [vmem:[%s3057_s8 + $0x48] sm:$0xff]  ;;  %v2122_v61 = vpack.c.bf16 %v1218_v13, %v1217_v17  ;;  %v1187_v54 = vld [vmem:[%s3057_s8 + $0xd0] sm:$0xff]  ;;  %v2344_v13 = vmov 0.0|0.0  }
 0x38d   : >> { %2087 = vmatprep.subr.bf16.mxu0 %v2086_v48  ;;  %v1201_v23 = vld [vmem:[%s3057_s8 + $0x140] sm:$0xff]  ;;  %v1202_v24 = vld [vmem:[%s3057_s8 + $0x148] sm:$0xff]  ;;  %v1188_v12 = vld [vmem:[%s3057_s8 + $0xd8] sm:$0xff]  ;;  %v2092_v26 = vpack.c.bf16 %v1170_v14, %v1169_v16 }
 0x38e   : >> { %2117 = vmatpush3.bf16.msra.mxu1 %v2116_v20  ;;  %v1219_v3 = vld [vmem:[%s3057_s8 + $0x1d0] sm:$0xff]  ;;  %v1220_v8 = vld [vmem:[%s3057_s8 + $0x1d8] sm:$0xff]  ;;  %v2124_v27 = vpack.c.bf16 %v1202_v24, %v1201_v23  ;;  %v2094_v28 = vpack.c.bf16 %v1188_v12, %v1187_v54  ;;  %v1189_v34 = vld [vmem:[%s3057_s8 + $0xe0] sm:$0xff] }
 0x38f   : >> { %2119 = vmatprep.subr.bf16.mxu1 %v2118_v0  ;;  %v1171_v29 = vld [vmem:[%s3057_s8 + $0x50] sm:$0xff]  ;;  %v1172_v30 = vld [vmem:[%s3057_s8 + $0x58] sm:$0xff]  ;;  %v2126_v32 = vpack.c.bf16 %v1220_v8, %v1219_v3  ;;  %v1190_v35 = vld [vmem:[%s3057_s8 + $0xe8] sm:$0xff] }
 0x390   : >> { %2089 = vmatpush3.bf16.msra.mxu0 %v2088_v22  ;;  %v1203_v31 = vld [vmem:[%s3057_s8 + $0x150] sm:$0xff]  ;;  %v1204_v33 = vld [vmem:[%s3057_s8 + $0x158] sm:$0xff]  ;;  %v1221_v36 = vld [vmem:[%s3057_s8 + $0x1e0] sm:$0xff]  ;;  %v2096_v38 = vpack.c.bf16 %v1172_v30, %v1171_v29  ;;  %v2098_v40 = vpack.c.bf16 %v1190_v35, %v1189_v34 }
 0x391   : >> { %2091 = vmatprep.subr.bf16.mxu0 %v2090_v1  ;;  %v1222_v37 = vld [vmem:[%s3057_s8 + $0x1e8] sm:$0xff]  ;;  %v2128_v39 = vpack.c.bf16 %v1204_v33, %v1203_v31  ;;  %v1173_v41 = vld [vmem:[%s3057_s8 + $0x60] sm:$0xff]  ;;  %v1191_v46 = vld [vmem:[%s3057_s8 + $0xf0] sm:$0xff] }
 0x392   : >> { %2121 = vmatpush3.bf16.msra.mxu1 %v2120_v10  ;;  %v1174_v42 = vld [vmem:[%s3057_s8 + $0x68] sm:$0xff]  ;;  %v1205_v43 = vld [vmem:[%s3057_s8 + $0x160] sm:$0xff]  ;;  %v2130_v44 = vpack.c.bf16 %v1222_v37, %v1221_v36  ;;  %v1192_v47 = vld [vmem:[%s3057_s8 + $0xf8] sm:$0xff] }
 0x393   : >> { %2123 = vmatprep.subr.bf16.mxu1 %v2122_v61  ;;  %v1206_v45 = vld [vmem:[%s3057_s8 + $0x168] sm:$0xff]  ;;  %v1223_v49 = vld [vmem:[%s3057_s8 + $0x1f0] sm:$0xff]  ;;  %v1224_v50 = vld [vmem:[%s3057_s8 + $0x1f8] sm:$0xff]  ;;  %v2100_v51 = vpack.c.bf16 %v1174_v42, %v1173_v41  ;;  %v2102_v53 = vpack.c.bf16 %v1192_v47, %v1191_v46 }
 0x394   : >> { %2093 = vmatpush3.bf16.msra.mxu0 %v2092_v26  ;;  %v2132_v52 = vpack.c.bf16 %v1206_v45, %v1205_v43  ;;  %v1175_v56 = vld [vmem:[%s3057_s8 + $0x70] sm:$0xff]  ;;  %v1176_v57 = vld [vmem:[%s3057_s8 + $0x78] sm:$0xff]  ;;  %v2134_v60 = vpack.c.bf16 %v1224_v50, %v1223_v49  ;;  %v1241_v59 = vld [vmem:[%s3057_s8 + $0x280] sm:$0xff]  ;;  %v2346_v26 = vmov 0.0  }
 0x395   : >> { %2095 = vmatprep.subr.bf16.mxu0 %v2094_v28  ;;  %v1207_v58 = vld [vmem:[%s3057_s8 + $0x170] sm:$0xff]  ;;  %v1208_v63 = vld [vmem:[%s3057_s8 + $0x178] sm:$0xff]  ;;  %v1242_v5 = vld [vmem:[%s3057_s8 + $0x288] sm:$0xff]  ;;  %v2104_v25 = vpack.c.bf16 %v1176_v57, %v1175_v56 }
 0x396   : >> { %2125 = vmatpush3.bf16.msra.mxu1 %v2124_v27  ;;  %v2136_v15 = vpack.c.bf16 %v1208_v63, %v1207_v58  ;;  %v2138_v11 = vpack.c.bf16 %v1242_v5, %v1241_v59  ;;  %v1225_v55 = vld [vmem:[%s3057_s8 + $0x200] sm:$0xff]  ;;  %v1226_v20 = vld [vmem:[%s3057_s8 + $0x208] sm:$0xff]  ;;  %v1243_v48 = vld [vmem:[%s3057_s8 + $0x290] sm:$0xff] }
 0x397   : >> { %2127 = vmatprep.subr.bf16.mxu1 %v2126_v32  ;;  %v1244_v19 = vld [vmem:[%s3057_s8 + $0x298] sm:$0xff]  ;;  %v2140_v6 = vpack.c.bf16 %v1226_v20, %v1225_v55  ;;  %v1257_v9 = vld [vmem:[%s3057_s8 + $0x300] sm:$0xff]  ;;  %v1258_v0 = vld [vmem:[%s3057_s8 + $0x308] sm:$0xff] }
 0x398   : >> { %2097 = vmatpush3.bf16.msra.mxu0 %v2096_v38  ;;  %v2142_v7 = vpack.c.bf16 %v1244_v19, %v1243_v48  ;;  %v1227_v21 = vld [vmem:[%s3057_s8 + $0x210] sm:$0xff]  ;;  %v1228_v18 = vld [vmem:[%s3057_s8 + $0x218] sm:$0xff]  ;;  %v1245_v4 = vld [vmem:[%s3057_s8 + $0x2a0] sm:$0xff]  ;;  %v2171_v22 = vpack.c.bf16 %v1258_v0, %v1257_v9 }
 0x399   : >> { %2099 = vmatprep.subr.bf16.mxu0 %v2098_v40  ;;  %v1246_v17 = vld [vmem:[%s3057_s8 + $0x2a8] sm:$0xff]  ;;  %v3273_v10 = vld [vmem:[#allocation41_spill] sm:$0xff]  ;;  %v1260_v14 = vld [vmem:[%s3057_s8 + $0x318] sm:$0xff]  ;;  %v2144_v23 = vpack.c.bf16 %v1228_v18, %v1227_v21 }
 0x39a   : >> { %2129 = vmatpush3.bf16.msra.mxu1 %v2128_v39  ;;  %v1272_v1 = vcombine.high %v3273_v10, %v3273_v10  ;;  %v1259_v16 = vld [vmem:[%s3057_s8 + $0x310] sm:$0xff]  ;;  %v2146_v61 = vpack.c.bf16 %v1246_v17, %v1245_v4  ;;  %v1229_v24 = vld [vmem:[%s3057_s8 + $0x220] sm:$0xff]  ;;  %v1230_v54 = vld [vmem:[%s3057_s8 + $0x228] sm:$0xff] }
 0x39b   : >> { %2131 = vmatprep.subr.bf16.mxu1 %v2130_v44  ;;  %v2174_v12 = vpack.c.bf16 %v1260_v14, %v1259_v16  ;;  %v1247_v3 = vld [vmem:[%s3057_s8 + $0x2b0] sm:$0xff]  ;;  %v1248_v8 = vld [vmem:[%s3057_s8 + $0x2b8] sm:$0xff]  ;;  %v2148_v27 = vpack.c.bf16 %v1230_v54, %v1229_v24  ;;  %v1249_v31 = vld [vmem:[%s3057_s8 + $0x2c0] sm:$0xff] }
 0x39c   : >> { %2101 = vmatpush3.bf16.msra.mxu0 %v2100_v51  ;;  %v2150_v28 = vpack.c.bf16 %v1248_v8, %v1247_v3  ;;  %v1231_v29 = vld [vmem:[%s3057_s8 + $0x230] sm:$0xff]  ;;  %v1232_v30 = vld [vmem:[%s3057_s8 + $0x238] sm:$0xff]  ;;  %v1250_v32 = vld [vmem:[%s3057_s8 + $0x2c8] sm:$0xff] }
 0x39d   : >> { %2103 = vmatprep.subr.bf16.mxu0 %v2102_v53  ;;  %v2152_v33 = vpack.c.bf16 %v1232_v30, %v1231_v29  ;;  %v3274_v34 = vld [vmem:[#allocation42_spill] sm:$0xff]  ;;  %v2154_v35 = vpack.c.bf16 %v1250_v32, %v1249_v31  ;;  %v1233_v36 = vld [vmem:[%s3057_s8 + $0x240] sm:$0xff]  ;;  %v1234_v37 = vld [vmem:[%s3057_s8 + $0x248] sm:$0xff] }
 0x39e   : >> { %2133 = vmatpush3.bf16.msra.mxu1 %v2132_v52  ;;  %v1251_v38 = vld [vmem:[%s3057_s8 + $0x2d0] sm:$0xff]  ;;  %v1252_v39 = vld [vmem:[%s3057_s8 + $0x2d8] sm:$0xff]  ;;  %v2156_v40 = vpack.c.bf16 %v1234_v37, %v1233_v36  ;;  %v1253_v44 = vld [vmem:[%s3057_s8 + $0x2e0] sm:$0xff] }
 0x39f   : >> { %2135 = vmatprep.subr.bf16.mxu1 %v2134_v60  ;;  %v2158_v41 = vpack.c.bf16 %v1252_v39, %v1251_v38  ;;  %v1235_v42 = vld [vmem:[%s3057_s8 + $0x250] sm:$0xff]  ;;  %v1236_v43 = vld [vmem:[%s3057_s8 + $0x258] sm:$0xff]  ;;  %v1254_v45 = vld [vmem:[%s3057_s8 + $0x2e8] sm:$0xff] }
 0x3a0   : >> { %2105 = vmatpush3.bf16.msra.mxu0 %v2104_v25  ;;  %v2160_v46 = vpack.c.bf16 %v1236_v43, %v1235_v42  ;;  %v2162_v47 = vpack.c.bf16 %v1254_v45, %v1253_v44  ;;  %v1237_v49 = vld [vmem:[%s3057_s8 + $0x260] sm:$0xff]  ;;  %v1238_v50 = vld [vmem:[%s3057_s8 + $0x268] sm:$0xff]  ;;  %v1255_v51 = vld [vmem:[%s3057_s8 + $0x2f0] sm:$0xff] }
 0x3a1   : >> { %2139 = vmatprep.subr.bf16.mxu0 %v2138_v11  ;;  %v1256_v52 = vld [vmem:[%s3057_s8 + $0x2f8] sm:$0xff]  ;;  %v2164_v53 = vpack.c.bf16 %v1238_v50, %v1237_v49  ;;  %v1239_v57 = vld [vmem:[%s3057_s8 + $0x270] sm:$0xff] }
 0x3a2   : >> { %2137 = vmatpush3.bf16.msra.mxu1 %v2136_v15  ;;  %v2166_v56 = vpack.c.bf16 %v1256_v52, %v1255_v51  ;;  %v1240_v58 = vld [vmem:[%s3057_s8 + $0x278] sm:$0xff] }
 0x3a3   : >> { %2170 = vmatprep.subr.bf16.mxu1 %v2344_v13  ;;  %1344 = vmatmul.mubr.f32.vlgmr.msra.gmra.mrb[0].mxu0 %v3270_v2  ;;  %v2168_v60 = vpack.c.bf16 %v1240_v58, %v1239_v57 }
 0x3a4   : >> { %2141 = vmatpush3.bf16.msra.mxu0 %v2140_v6  ;;  %1483 = vmatprep.mubr.f32.mxu0 %v1272_v1 }
 0x3a5   : >> { %1414 = vmatmul.mubr.f32.vlgmr.msra.gmra.mrb[0].mxu1 %v3271_v62  ;;  %2143 = vmatprep.subr.bf16.mxu0 %v2142_v7 }
 0x3a6   : >> { %2172 = vmatpush3.bf16.msra.mxu1 %v2171_v22  ;;  %1967 = vmatprep.mubr.msk.f32.mxu1 %vm2345_vm9, %v2346_v26 }
 0x3a7   : >> { %2173 = vmatprep.subr.bf16.mxu1 %v2344_v13 }
 0x3a8   : >> { %2145 = vmatpush3.bf16.msra.mxu0 %v2144_v23 }
 0x3a9   : >> { %2147 = vmatprep.subr.bf16.mxu0 %v2146_v61 }
 0x3aa   : >> { %2175 = vmatpush3.bf16.msra.mxu1 %v2174_v12 }
 0x3ac   : >> { %2149 = vmatpush3.bf16.msra.mxu0 %v2148_v27 }
 0x3ad   : >> { %1968 = vmatmul.mubr.msk.f32.vlgmr.msra.gmra.mrb[2].mxu1 %vm1276_vm10, %v3274_v34  ;;  %2151 = vmatprep.subr.bf16.mxu0 %v2150_v28 }
 0x3b0   : >> { %2153 = vmatpush3.bf16.msra.mxu0 %v2152_v33 }
 0x3b1   : >> { %2155 = vmatprep.subr.bf16.mxu0 %v2154_v35 }
 0x3b4   : >> { %2157 = vmatpush3.bf16.msra.mxu0 %v2156_v40 }
 0x3b5   : >> { %2159 = vmatprep.subr.bf16.mxu0 %v2158_v41 }
 0x3b8   : >> { %2161 = vmatpush3.bf16.msra.mxu0 %v2160_v46 }
 0x3b9   : >> { %2163 = vmatprep.subr.bf16.mxu0 %v2162_v47 }
 0x3bc   : >> { %2165 = vmatpush3.bf16.msra.mxu0 %v2164_v53 }
 0x3bd   : >> { %2167 = vmatprep.subr.bf16.mxu0 %v2166_v56 }
 0x3c0   : >> { %2169 = vmatpush3.bf16.msra.mxu0 %v2168_v60 }
 0x3c3   : >> { %1484 = vmatmul.mubr.f32.vlgmr.msra.gmra.mrb[2].mxu0 %v3273_v10 }
 0x3fb   : >> { %v1264_v59 = vpop.permute.xlu0 %1263 }
 0x476   : >> { %v1859_v63 = vpop.f32.mrb[0].mxu0 }
 0x477   : >> { %v1860_v5 = vpop.f32.mrb[1].mxu0 }
 0x478   : >> { %v1894_v25 = vpop.f32.mrb[0].mxu1  ;;  %v1861_v15 = vadd.f32 %v1860_v5, %v1859_v63 }
 0x479   : >> { %v1895_v11 = vpop.f32.mrb[1].mxu1 }
 0x47a   : >> { %v1896_v55 = vadd.f32 %v1895_v11, %v1894_v25  ;;  %v1346_v20 = vadd.f32 %v1861_v15, %v1264_v59 }
 0x47c   : >> { %v1416_v48 = vadd.f32 %v1896_v55, %v1346_v20 }
 0x480   : >> { %v1555_v19 = vpop.f32.mrb[2].mxu1 }
 0x481   : >> { %v1969_v6 = vpop.f32.mrb[3].mxu1 }
 0x496   : >> { %v1929_v9 = vpop.f32.mrb[2].mxu0 }
 0x497   : >> { %v1930_v0 = vpop.f32.mrb[3].mxu0 }
 0x498   : >> { %v1931_v7 = vadd.f32 %v1930_v0, %v1929_v9  ;;  %1157 = sbr.rel (!%p1155_p12) target bundleno = 890 (0x37a), region = 164 }
 0x49a   : >> { %v1486_v21 = vadd.f32 %v1931_v7, %v1416_v48 }
 0x49c   : >> { %v1556_v18 = vadd.f32 %v1555_v19, %v1486_v21 }
 0x49e   : >> { %1562 = vst.msk [vmem:[%s1560_s12] sm:$0x7] %vm1561_vm11, %v1556_v18 }
 0x49f PF: > { %s17_s28 = sadd.s32 1, %s2314_s28   ;;  %s3275_s24 = smov %s2306_s26 }
 0x4a0   : > { %p14_p13 = scmp.ge.s32.totalorder %s17_s28, 6   ;;  %s3276_s25 = smov %s2310_s27 }
 0x4a1   : > { %s3277_s26 = smov %s3280_s29  ;;  %s3278_s27 = smov %s3284_s30 }
 0x4a2   :  { %16 = sbr.rel (!%p14_p13) target bundleno = 3 (0x3), region = 175 }

</bundles_post_ra>
